<compile_context>
chip_gen: v5e
topology: v5e:2x2
jax: 0.10.0
libtpu: 0.0.40
codegen_flags: <defaults>
</compile_context>

<pallas_src>
import math
import functools

import jax
import jax.numpy as jnp
from jax.experimental import pallas as pl
from jax.experimental.pallas import tpu as pltpu


# ---------------------------------------------------------------------------
# Pallas kernel: one grid step == one block of Bt batch elements, fully fused.
# ---------------------------------------------------------------------------
def transformer_layer_kernel(
    q_ref, k_ref, v_ref,
    wk_t_ref, wv_t_ref, wo_t_ref,
    w1_t_ref, b1_ref, w2_t_ref,
    pvec_ref,
    out_ref,
    *, n_heads, d_k, mask_k, eps=1e-5,
):
    Bt, S, D = q_ref.shape
    N = Bt * S

    # Packed per-feature params: one (8, D) slab instead of 8 tiny inputs.
    pvec = pvec_ref[...]
    bk, bv, bo = pvec[0:1], pvec[1:2], pvec[2:3]
    ln1_g, ln1_b = pvec[3:4], pvec[4:5]
    b2 = pvec[5:6]
    ln2_g, ln2_b = pvec[6:7], pvec[7:8]

    # src_mask = (np.triu(ones, k=mask_k) == 0)  <=>  col < row + mask_k
    row = jax.lax.broadcasted_iota(jnp.int32, (S, S), 0)
    col = jax.lax.broadcasted_iota(jnp.int32, (S, S), 1)
    allow = col < row + mask_k                                     # (S, S) bool

    # Collapse batch into sublanes: everything below works on (N, D) slabs.
    q2d = q_ref[...].reshape(N, D)
    k2d = k_ref[...].reshape(N, D)
    v2d = v_ref[...].reshape(N, D)

    # kq_same=True -> q and k share k_linear: one stacked (2N, D) @ (D, D).
    qk = jnp.dot(jnp.concatenate([q2d, k2d], axis=0), wk_t_ref[...],
                 preferred_element_type=jnp.float32) + bk          # (2N, D)
    scale = jnp.float32(1.0 / math.sqrt(d_k))
    qproj = qk[:N] * scale              # fold 1/sqrt(d_k) into q (not shared k!)
    kproj = qk[N:]
    vproj = jnp.dot(v2d, wv_t_ref[...],
                    preferred_element_type=jnp.float32) + bv       # (N, D)

    # Head-major views (H*Bt, S, d_k) for rank-3 batched attention.
    def split_heads(x2d):
        cols = [x2d[:, h * d_k:(h + 1) * d_k] for h in range(n_heads)]
        return jnp.stack(cols, axis=0).reshape(n_heads * Bt, S, d_k)

    qh = split_heads(qproj)
    kh = split_heads(kproj)
    vh = split_heads(vproj)

    scores = jnp.einsum('nqd,nkd->nqk', qh, kh,
                        preferred_element_type=jnp.float32)        # (H*Bt, S, S)
    scores = jnp.where(allow[None], scores, jnp.float32(-1e32))
    m = jnp.max(scores, axis=-1, keepdims=True)
    e = jnp.exp(scores - m)
    p = e / jnp.sum(e, axis=-1, keepdims=True)                     # exact divide
    if mask_k < 1:
        # Only needed when whole rows are masked (uniform softmax must be zeroed).
        p = p * allow.astype(jnp.float32)[None]
    ctx = jnp.einsum('nqk,nkd->nqd', p, vh,
                     preferred_element_type=jnp.float32)           # (H*Bt, S, dk)

    # Output projection: single head concat + ONE (N, D) @ (D, D) matmul.
    ctx3 = ctx.reshape(n_heads, N, d_k)
    concat = jnp.concatenate([ctx3[h] for h in range(n_heads)], axis=-1)  # (N, D)
    attn = jnp.dot(concat, wo_t_ref[...],
                   preferred_element_type=jnp.float32) + bo

    def layer_norm(x, g, b):
        mu = jnp.mean(x, axis=-1, keepdims=True)
        var = jnp.mean((x - mu) ** 2, axis=-1, keepdims=True)
        return (x - mu) / jnp.sqrt(var + eps) * g + b

    # Residual + LN1 + FFN + residual + LN2 on the whole (N, D) slab.
    x = layer_norm(q2d + attn, ln1_g, ln1_b)
    h1 = jnp.maximum(
        jnp.dot(x, w1_t_ref[...], preferred_element_type=jnp.float32)
        + b1_ref[...], 0.0)
    ff = jnp.dot(h1, w2_t_ref[...], preferred_element_type=jnp.float32) + b2
    y = layer_norm(x + ff, ln2_g, ln2_b)

    out_ref[...] = y.reshape(Bt, S, D)


# ---------------------------------------------------------------------------
# Wrapper
# ---------------------------------------------------------------------------
def _default_batch_block(B):
    # v7x has 2 TensorCores -> give the 'parallel' grid axis >= 2 steps there.
    # Single-TC chips (v5e/v6e) keep one grid step (no per-step overhead).
    try:
        kind = jax.devices()[0].device_kind.lower()
    except Exception:
        kind = ""
    if "v7" in kind and B % 2 == 0:
        return B // 2
    return B


def transformer_layer(query, key, values, mask_int, params, *, n_heads, d_k,
                      batch_block=None):
    B, S, D = query.shape
    d_ff = params["w1"].shape[0]
    Bt = _default_batch_block(B) if batch_block is None else batch_block
    assert B % Bt == 0, "batch_block must divide batch"

    # Pre-orient all weights ONCE outside the kernel (free XLA-side work):
    wk_t = params["wk"].T                          # (D, D)
    wv_t = params["wv"].T                          # (D, D)
    wo_t = params["wo"].T                          # (D, D)
    w1_t = params["w1"].T                          # (D, d_ff)
    w2_t = params["w2"].T                          # (d_ff, D)
    # Pack the eight (1, D) vectors into one (8, D) slab (one DMA, one block).
    pvec = jnp.concatenate(
        [params["bk"], params["bv"], params["bo"],
         params["ln1_g"], params["ln1_b"], params["b2"],
         params["ln2_g"], params["ln2_b"]], axis=0)

    xspec = pl.BlockSpec((Bt, S, D), lambda b: (b, 0, 0))

    def full(shape):
        return pl.BlockSpec(shape, lambda b: tuple(0 for _ in shape))

    # NOTE: constant-index weight blocks could be single-buffered
    # (pipeline_mode=pl.Buffered(1)) for large D/d_ff on v7x; negligible here.
    kernel = functools.partial(transformer_layer_kernel,
                               n_heads=n_heads, d_k=d_k, mask_k=int(mask_int))

    return pl.pallas_call(
        kernel,
        out_shape=jax.ShapeDtypeStruct((B, S, D), jnp.float32),
        grid_spec=pltpu.PrefetchScalarGridSpec(
            num_scalar_prefetch=0,
            grid=(B // Bt,),
            in_specs=[
                xspec, xspec, xspec,                 # query, key, values
                full((D, D)),                        # Wk^T  (shared q/k proj)
                full((D, D)),                        # Wv^T
                full((D, D)),                        # Wo^T
                full((D, d_ff)), full((1, d_ff)),    # W1^T, b1
                full((d_ff, D)),                     # W2^T
                full((8, D)),                        # packed small params
            ],
            out_specs=xspec,
        ),
        compiler_params=pltpu.CompilerParams(
            dimension_semantics=("parallel",),
            vmem_limit_bytes=32 * 1024 * 1024,
        ),
    )(
        query, key, values,
        wk_t, wv_t, wo_t,
        w1_t, params["b1"], w2_t,
        pvec,
    )


# ---------------------------------------------------------------------------
# Pure-JAX reference (same math, batched) for verification
# ---------------------------------------------------------------------------
def transformer_layer_ref(query, key, values, mask_int, params, *, n_heads, d_k):
    B, S, D = query.shape
    eps = 1e-5
    maskf = (jnp.triu(jnp.ones((S, S), jnp.float32), k=mask_int) == 0).astype(
        jnp.float32)

    def lin(x, w, b):
        return jnp.einsum("bsd,od->bso", x, w) + b

    q = lin(query, params["wk"], params["bk"])     # kq_same
    k = lin(key, params["wk"], params["bk"])
    v = lin(values, params["wv"], params["bv"])

    def heads(x):
        return x.reshape(B, S, n_heads, d_k).transpose(0, 2, 1, 3)

    qh, kh, vh = heads(q), heads(k), heads(v)
    scores = jnp.einsum("bhqd,bhkd->bhqk", qh, kh) / math.sqrt(d_k)
    scores = jnp.where(maskf[None, None] > 0, scores, -1e32)
    p = jax.nn.softmax(scores, axis=-1) * maskf[None, None]
    out = jnp.einsum("bhqk,bhkd->bhqd", p, vh)
    concat = out.transpose(0, 2, 1, 3).reshape(B, S, D)
    attn = lin(concat, params["wo"], params["bo"])

    def layer_norm(x, g, b):
        mu = jnp.mean(x, -1, keepdims=True)
        var = jnp.mean((x - mu) ** 2, -1, keepdims=True)
        return (x - mu) / jnp.sqrt(var + eps) * g + b

    x = layer_norm(query + attn, params["ln1_g"], params["ln1_b"])
    ff = lin(jax.nn.relu(lin(x, params["w1"], params["b1"])),
             params["w2"], params["b2"])
    return layer_norm(x + ff, params["ln2_g"], params["ln2_b"])


# ---------------------------------------------------------------------------
def init_params(key, d_model, d_ff):
    def xavier(key, out_f, in_f):
        bound = math.sqrt(6.0 / (in_f + out_f))
        return jax.random.uniform(key, (out_f, in_f), jnp.float32, -bound, bound)

    ks = jax.random.split(key, 6)
    return {
        "wk": xavier(ks[0], d_model, d_model),
        "bk": jnp.zeros((1, d_model), jnp.float32),
        "wv": xavier(ks[1], d_model, d_model),
        "bv": jnp.zeros((1, d_model), jnp.float32),
        "wo": xavier(ks[2], d_model, d_model),
        "bo": jnp.zeros((1, d_model), jnp.float32),
        "ln1_g": jnp.ones((1, d_model), jnp.float32),
        "ln1_b": jnp.zeros((1, d_model), jnp.float32),
        "w1": xavier(ks[3], d_ff, d_model),
        "b1": 0.01 * jax.random.normal(ks[4], (1, d_ff), jnp.float32),
        "w2": xavier(ks[5], d_model, d_ff),
        "b2": jnp.zeros((1, d_model), jnp.float32),
        "ln2_g": jnp.ones((1, d_model), jnp.float32),
        "ln2_b": jnp.zeros((1, d_model), jnp.float32),
    }


if __name__ == "__main__":
    B, S, D = 2, 8, 32
    N_HEADS, D_K, D_FF = 4, 8, 64
    MASK = 1           # TransformerLayer.forward(mask=1, ...) -> causal incl. diag

    root = jax.random.PRNGKey(0)
    kq, kk, kv, kp = jax.random.split(root, 4)
    query = jax.random.normal(kq, (B, S, D), jnp.float32)
    key_in = jax.random.normal(kk, (B, S, D), jnp.float32)
    values = jax.random.normal(kv, (B, S, D), jnp.float32)
    params = init_params(kp, D, D_FF)

    out = transformer_layer(query, key_in, values, MASK, params,
                            n_heads=N_HEADS, d_k=D_K)
    out = jax.block_until_ready(out)

    ref = transformer_layer_ref(query, key_in, values, MASK, params,
                                n_heads=N_HEADS, d_k=D_K)
    assert out.shape == (B, S, D)
    # Exact softmax divide -> differences are f32 rounding only.
    assert jnp.allclose(out, ref, atol=1e-3, rtol=1e-3), (
        f"max abs diff {jnp.max(jnp.abs(out - ref))}")
    print("KERNEL_OK")
</pallas_src>

<mosaic_0001>
module attributes {stable_mosaic.version = 11 : i64} {
  func.func @transformer_layer_kernel(%arg0: i32, %arg1: memref<2x8x32xf32, #tpu.memory_space<vmem>>, %arg2: memref<2x8x32xf32, #tpu.memory_space<vmem>>, %arg3: memref<2x8x32xf32, #tpu.memory_space<vmem>>, %arg4: memref<32x32xf32, #tpu.memory_space<vmem>>, %arg5: memref<32x32xf32, #tpu.memory_space<vmem>>, %arg6: memref<32x32xf32, #tpu.memory_space<vmem>>, %arg7: memref<32x64xf32, #tpu.memory_space<vmem>>, %arg8: memref<1x64xf32, #tpu.memory_space<vmem>>, %arg9: memref<64x32xf32, #tpu.memory_space<vmem>>, %arg10: memref<8x32xf32, #tpu.memory_space<vmem>>, %arg11: memref<2x8x32xf32, #tpu.memory_space<vmem>>) attributes {dimension_semantics = [#tpu.dimension_semantics<parallel>], iteration_bounds = array<i64: 1>, scalar_prefetch = 0 : i64, scratch_operands = 0 : i64, tpu.core_type = #tpu.core_type<tc>, window_params = [{transform_indices = @transform_0, window_bounds = array<i64: 2, 8, 32>}, {transform_indices = @transform_1, window_bounds = array<i64: 2, 8, 32>}, {transform_indices = @transform_2, window_bounds = array<i64: 2, 8, 32>}, {pipeline_mode = #tpu.pipeline_mode<synchronous>, transform_indices = @transform_3, window_bounds = array<i64: 32, 32>}, {pipeline_mode = #tpu.pipeline_mode<synchronous>, transform_indices = @transform_4, window_bounds = array<i64: 32, 32>}, {pipeline_mode = #tpu.pipeline_mode<synchronous>, transform_indices = @transform_5, window_bounds = array<i64: 32, 32>}, {pipeline_mode = #tpu.pipeline_mode<synchronous>, transform_indices = @transform_6, window_bounds = array<i64: 32, 64>}, {pipeline_mode = #tpu.pipeline_mode<synchronous>, transform_indices = @transform_7, window_bounds = array<i64: 1, 64>}, {pipeline_mode = #tpu.pipeline_mode<synchronous>, transform_indices = @transform_8, window_bounds = array<i64: 64, 32>}, {pipeline_mode = #tpu.pipeline_mode<synchronous>, transform_indices = @transform_9, window_bounds = array<i64: 8, 32>}, {transform_indices = @transform_10, window_bounds = array<i64: 2, 8, 32>}]} {
    %c0 = arith.constant 0 : index
    %c0_0 = arith.constant 0 : index
    %0 = vector.load %arg10[%c0, %c0_0] : memref<8x32xf32, #tpu.memory_space<vmem>>, vector<8x32xf32>
    %1 = vector.extract_strided_slice %0 {offsets = [0, 0], sizes = [1, 32], strides = [1, 1]} : vector<8x32xf32> to vector<1x32xf32>
    %2 = vector.extract_strided_slice %0 {offsets = [1, 0], sizes = [1, 32], strides = [1, 1]} : vector<8x32xf32> to vector<1x32xf32>
    %3 = vector.extract_strided_slice %0 {offsets = [2, 0], sizes = [1, 32], strides = [1, 1]} : vector<8x32xf32> to vector<1x32xf32>
    %4 = vector.extract_strided_slice %0 {offsets = [3, 0], sizes = [1, 32], strides = [1, 1]} : vector<8x32xf32> to vector<1x32xf32>
    %5 = vector.extract_strided_slice %0 {offsets = [4, 0], sizes = [1, 32], strides = [1, 1]} : vector<8x32xf32> to vector<1x32xf32>
    %6 = vector.extract_strided_slice %0 {offsets = [5, 0], sizes = [1, 32], strides = [1, 1]} : vector<8x32xf32> to vector<1x32xf32>
    %7 = vector.extract_strided_slice %0 {offsets = [6, 0], sizes = [1, 32], strides = [1, 1]} : vector<8x32xf32> to vector<1x32xf32>
    %8 = vector.extract_strided_slice %0 {offsets = [7, 0], sizes = [1, 32], strides = [1, 1]} : vector<8x32xf32> to vector<1x32xf32>
    %9 = tpu.iota {dimensions = array<i32: 0>} : vector<8x8xi32>
    %10 = tpu.iota {dimensions = array<i32: 1>} : vector<8x8xi32>
    %c1_i32 = arith.constant 1 : i32
    %11 = vector.broadcast %c1_i32 : i32 to vector<8x8xi32>
    %12 = arith.addi %9, %11 : vector<8x8xi32>
    %13 = arith.cmpi slt, %10, %12 : vector<8x8xi32>
    %c0_1 = arith.constant 0 : index
    %c0_2 = arith.constant 0 : index
    %c0_3 = arith.constant 0 : index
    %14 = vector.load %arg1[%c0_1, %c0_2, %c0_3] : memref<2x8x32xf32, #tpu.memory_space<vmem>>, vector<2x8x32xf32>
    %15 = vector.shape_cast %14 : vector<2x8x32xf32> to vector<16x32xf32>
    %c0_4 = arith.constant 0 : index
    %c0_5 = arith.constant 0 : index
    %c0_6 = arith.constant 0 : index
    %16 = vector.load %arg2[%c0_4, %c0_5, %c0_6] : memref<2x8x32xf32, #tpu.memory_space<vmem>>, vector<2x8x32xf32>
    %17 = vector.shape_cast %16 : vector<2x8x32xf32> to vector<16x32xf32>
    %c0_7 = arith.constant 0 : index
    %c0_8 = arith.constant 0 : index
    %c0_9 = arith.constant 0 : index
    %18 = vector.load %arg3[%c0_7, %c0_8, %c0_9] : memref<2x8x32xf32, #tpu.memory_space<vmem>>, vector<2x8x32xf32>
    %19 = vector.shape_cast %18 : vector<2x8x32xf32> to vector<16x32xf32>
    %20 = tpu.concatenate %15, %17 in 0 : vector<16x32xf32>, vector<16x32xf32> -> vector<32x32xf32>
    %c0_10 = arith.constant 0 : index
    %c0_11 = arith.constant 0 : index
    %21 = vector.load %arg4[%c0_10, %c0_11] : memref<32x32xf32, #tpu.memory_space<vmem>>, vector<32x32xf32>
    %cst = arith.constant dense<0.000000e+00> : vector<32x32xf32>
    %22 = tpu.matmul %20, %21, %cst {dimension_numbers = #tpu.dot_dimension_numbers<[1], [0], [0], [1], [0, 0, 1, 1], [], []>} : vector<32x32xf32>, vector<32x32xf32>, vector<32x32xf32> -> vector<32x32xf32>
    %23 = vector.broadcast %1 : vector<1x32xf32> to vector<32x32xf32>
    %24 = arith.addf %22, %23 : vector<32x32xf32>
    %25 = vector.extract_strided_slice %24 {offsets = [0, 0], sizes = [16, 32], strides = [1, 1]} : vector<32x32xf32> to vector<16x32xf32>
    %cst_12 = arith.constant 0.353553385 : f32
    %26 = vector.broadcast %cst_12 : f32 to vector<16x32xf32>
    %27 = arith.mulf %25, %26 : vector<16x32xf32>
    %28 = vector.extract_strided_slice %24 {offsets = [16, 0], sizes = [16, 32], strides = [1, 1]} : vector<32x32xf32> to vector<16x32xf32>
    %c0_13 = arith.constant 0 : index
    %c0_14 = arith.constant 0 : index
    %29 = vector.load %arg5[%c0_13, %c0_14] : memref<32x32xf32, #tpu.memory_space<vmem>>, vector<32x32xf32>
    %cst_15 = arith.constant dense<0.000000e+00> : vector<16x32xf32>
    %30 = tpu.matmul %19, %29, %cst_15 {dimension_numbers = #tpu.dot_dimension_numbers<[1], [0], [0], [1], [0, 0, 1, 1], [], []>} : vector<16x32xf32>, vector<32x32xf32>, vector<16x32xf32> -> vector<16x32xf32>
    %31 = vector.broadcast %2 : vector<1x32xf32> to vector<16x32xf32>
    %32 = arith.addf %30, %31 : vector<16x32xf32>
    %33 = vector.extract_strided_slice %27 {offsets = [0, 0], sizes = [16, 8], strides = [1, 1]} : vector<16x32xf32> to vector<16x8xf32>
    %34 = vector.extract_strided_slice %27 {offsets = [0, 8], sizes = [16, 8], strides = [1, 1]} : vector<16x32xf32> to vector<16x8xf32>
    %35 = vector.extract_strided_slice %27 {offsets = [0, 16], sizes = [16, 8], strides = [1, 1]} : vector<16x32xf32> to vector<16x8xf32>
    %36 = vector.extract_strided_slice %27 {offsets = [0, 24], sizes = [16, 8], strides = [1, 1]} : vector<16x32xf32> to vector<16x8xf32>
    %37 = vector.shape_cast %33 : vector<16x8xf32> to vector<1x16x8xf32>
    %38 = vector.shape_cast %34 : vector<16x8xf32> to vector<1x16x8xf32>
    %39 = vector.shape_cast %35 : vector<16x8xf32> to vector<1x16x8xf32>
    %40 = vector.shape_cast %36 : vector<16x8xf32> to vector<1x16x8xf32>
    %41 = tpu.concatenate %37, %38, %39, %40 in 0 : vector<1x16x8xf32>, vector<1x16x8xf32>, vector<1x16x8xf32>, vector<1x16x8xf32> -> vector<4x16x8xf32>
    %42 = vector.shape_cast %41 : vector<4x16x8xf32> to vector<8x8x8xf32>
    %43 = vector.extract_strided_slice %28 {offsets = [0, 0], sizes = [16, 8], strides = [1, 1]} : vector<16x32xf32> to vector<16x8xf32>
    %44 = vector.extract_strided_slice %28 {offsets = [0, 8], sizes = [16, 8], strides = [1, 1]} : vector<16x32xf32> to vector<16x8xf32>
    %45 = vector.extract_strided_slice %28 {offsets = [0, 16], sizes = [16, 8], strides = [1, 1]} : vector<16x32xf32> to vector<16x8xf32>
    %46 = vector.extract_strided_slice %28 {offsets = [0, 24], sizes = [16, 8], strides = [1, 1]} : vector<16x32xf32> to vector<16x8xf32>
    %47 = vector.shape_cast %43 : vector<16x8xf32> to vector<1x16x8xf32>
    %48 = vector.shape_cast %44 : vector<16x8xf32> to vector<1x16x8xf32>
    %49 = vector.shape_cast %45 : vector<16x8xf32> to vector<1x16x8xf32>
    %50 = vector.shape_cast %46 : vector<16x8xf32> to vector<1x16x8xf32>
    %51 = tpu.concatenate %47, %48, %49, %50 in 0 : vector<1x16x8xf32>, vector<1x16x8xf32>, vector<1x16x8xf32>, vector<1x16x8xf32> -> vector<4x16x8xf32>
    %52 = vector.shape_cast %51 : vector<4x16x8xf32> to vector<8x8x8xf32>
    %53 = vector.extract_strided_slice %32 {offsets = [0, 0], sizes = [16, 8], strides = [1, 1]} : vector<16x32xf32> to vector<16x8xf32>
    %54 = vector.extract_strided_slice %32 {offsets = [0, 8], sizes = [16, 8], strides = [1, 1]} : vector<16x32xf32> to vector<16x8xf32>
    %55 = vector.extract_strided_slice %32 {offsets = [0, 16], sizes = [16, 8], strides = [1, 1]} : vector<16x32xf32> to vector<16x8xf32>
    %56 = vector.extract_strided_slice %32 {offsets = [0, 24], sizes = [16, 8], strides = [1, 1]} : vector<16x32xf32> to vector<16x8xf32>
    %57 = vector.shape_cast %53 : vector<16x8xf32> to vector<1x16x8xf32>
    %58 = vector.shape_cast %54 : vector<16x8xf32> to vector<1x16x8xf32>
    %59 = vector.shape_cast %55 : vector<16x8xf32> to vector<1x16x8xf32>
    %60 = vector.shape_cast %56 : vector<16x8xf32> to vector<1x16x8xf32>
    %61 = tpu.concatenate %57, %58, %59, %60 in 0 : vector<1x16x8xf32>, vector<1x16x8xf32>, vector<1x16x8xf32>, vector<1x16x8xf32> -> vector<4x16x8xf32>
    %62 = vector.shape_cast %61 : vector<4x16x8xf32> to vector<8x8x8xf32>
    "tpu.trace_start"() <{level = 10 : i32, message = "nqd,nkd->nqk"}> : () -> ()
    %cst_16 = arith.constant dense<0.000000e+00> : vector<8x8x8xf32>
    %63 = tpu.matmul %42, %52, %cst_16 {dimension_numbers = #tpu.dot_dimension_numbers<[2], [2], [1], [1], [0, 0, 0, 1, 1, 1], [0], [0]>} : vector<8x8x8xf32>, vector<8x8x8xf32>, vector<8x8x8xf32> -> vector<8x8x8xf32>
    "tpu.trace_stop"() : () -> ()
    %64 = vector.shape_cast %13 : vector<8x8xi1> to vector<1x8x8xi1>
    %cst_17 = arith.constant -1.000000e+32 : f32
    %65 = vector.shape_cast %64 : vector<1x8x8xi1> to vector<1x8x8xi1>
    %66 = vector.broadcast %65 : vector<1x8x8xi1> to vector<8x8x8xi1>
    %67 = vector.broadcast %cst_17 : f32 to vector<8x8x8xf32>
    %68 = arith.select %66, %63, %67 : vector<8x8x8xi1>, vector<8x8x8xf32>
    %cst_18 = arith.constant dense<0xFF800000> : vector<8x8xf32>
    %69 = vector.multi_reduction <maximumf>, %68, %cst_18 [2] : vector<8x8x8xf32> to vector<8x8xf32>
    %70 = vector.shape_cast %69 : vector<8x8xf32> to vector<8x8x1xf32>
    %71 = vector.broadcast %70 : vector<8x8x1xf32> to vector<8x8x8xf32>
    %72 = arith.subf %68, %71 : vector<8x8x8xf32>
    %73 = math.exp %72 : vector<8x8x8xf32>
    %cst_19 = arith.constant dense<0.000000e+00> : vector<8x8xf32>
    %74 = vector.multi_reduction <add>, %73, %cst_19 [2] : vector<8x8x8xf32> to vector<8x8xf32>
    %75 = vector.shape_cast %74 : vector<8x8xf32> to vector<8x8x1xf32>
    %76 = vector.broadcast %75 : vector<8x8x1xf32> to vector<8x8x8xf32>
    %77 = arith.divf %73, %76 : vector<8x8x8xf32>
    "tpu.trace_start"() <{level = 10 : i32, message = "nqk,nkd->nqd"}> : () -> ()
    %cst_20 = arith.constant dense<0.000000e+00> : vector<8x8x8xf32>
    %78 = tpu.matmul %77, %62, %cst_20 {dimension_numbers = #tpu.dot_dimension_numbers<[2], [1], [1], [2], [0, 0, 0, 1, 1, 2], [0], [0]>} : vector<8x8x8xf32>, vector<8x8x8xf32>, vector<8x8x8xf32> -> vector<8x8x8xf32>
    "tpu.trace_stop"() : () -> ()
    %79 = vector.shape_cast %78 : vector<8x8x8xf32> to vector<4x16x8xf32>
    %80 = vector.extract_strided_slice %79 {offsets = [0, 0, 0], sizes = [1, 16, 8], strides = [1, 1, 1]} : vector<4x16x8xf32> to vector<1x16x8xf32>
    %81 = vector.shape_cast %80 : vector<1x16x8xf32> to vector<16x8xf32>
    %82 = vector.extract_strided_slice %79 {offsets = [1, 0, 0], sizes = [1, 16, 8], strides = [1, 1, 1]} : vector<4x16x8xf32> to vector<1x16x8xf32>
    %83 = vector.shape_cast %82 : vector<1x16x8xf32> to vector<16x8xf32>
    %84 = vector.extract_strided_slice %79 {offsets = [2, 0, 0], sizes = [1, 16, 8], strides = [1, 1, 1]} : vector<4x16x8xf32> to vector<1x16x8xf32>
    %85 = vector.shape_cast %84 : vector<1x16x8xf32> to vector<16x8xf32>
    %86 = vector.extract_strided_slice %79 {offsets = [3, 0, 0], sizes = [1, 16, 8], strides = [1, 1, 1]} : vector<4x16x8xf32> to vector<1x16x8xf32>
    %87 = vector.shape_cast %86 : vector<1x16x8xf32> to vector<16x8xf32>
    %88 = tpu.concatenate %81, %83, %85, %87 in 1 : vector<16x8xf32>, vector<16x8xf32>, vector<16x8xf32>, vector<16x8xf32> -> vector<16x32xf32>
    %c0_21 = arith.constant 0 : index
    %c0_22 = arith.constant 0 : index
    %89 = vector.load %arg6[%c0_21, %c0_22] : memref<32x32xf32, #tpu.memory_space<vmem>>, vector<32x32xf32>
    %cst_23 = arith.constant dense<0.000000e+00> : vector<16x32xf32>
    %90 = tpu.matmul %88, %89, %cst_23 {dimension_numbers = #tpu.dot_dimension_numbers<[1], [0], [0], [1], [0, 0, 1, 1], [], []>} : vector<16x32xf32>, vector<32x32xf32>, vector<16x32xf32> -> vector<16x32xf32>
    %91 = vector.broadcast %3 : vector<1x32xf32> to vector<16x32xf32>
    %92 = arith.addf %90, %91 : vector<16x32xf32>
    %93 = arith.addf %15, %92 : vector<16x32xf32>
    %cst_24 = arith.constant dense<0.000000e+00> : vector<16xf32>
    %94 = vector.multi_reduction <add>, %93, %cst_24 [1] : vector<16x32xf32> to vector<16xf32>
    %95 = vector.shape_cast %94 : vector<16xf32> to vector<16x1xf32>
    %cst_25 = arith.constant 3.200000e+01 : f32
    %96 = vector.broadcast %cst_25 : f32 to vector<16x1xf32>
    %97 = arith.divf %95, %96 : vector<16x1xf32>
    %98 = vector.broadcast %97 : vector<16x1xf32> to vector<16x32xf32>
    %99 = arith.subf %93, %98 : vector<16x32xf32>
    %100 = arith.mulf %99, %99 : vector<16x32xf32>
    %cst_26 = arith.constant dense<0.000000e+00> : vector<16xf32>
    %101 = vector.multi_reduction <add>, %100, %cst_26 [1] : vector<16x32xf32> to vector<16xf32>
    %102 = vector.shape_cast %101 : vector<16xf32> to vector<16x1xf32>
    %cst_27 = arith.constant 3.200000e+01 : f32
    %103 = vector.broadcast %cst_27 : f32 to vector<16x1xf32>
    %104 = arith.divf %102, %103 : vector<16x1xf32>
    %105 = vector.broadcast %97 : vector<16x1xf32> to vector<16x32xf32>
    %106 = arith.subf %93, %105 : vector<16x32xf32>
    %cst_28 = arith.constant 9.99999974E-6 : f32
    %107 = vector.broadcast %cst_28 : f32 to vector<16x1xf32>
    %108 = arith.addf %104, %107 : vector<16x1xf32>
    %109 = math.sqrt %108 : vector<16x1xf32>
    %110 = vector.broadcast %109 : vector<16x1xf32> to vector<16x32xf32>
    %111 = arith.divf %106, %110 : vector<16x32xf32>
    %112 = vector.broadcast %4 : vector<1x32xf32> to vector<16x32xf32>
    %113 = arith.mulf %111, %112 : vector<16x32xf32>
    %114 = vector.broadcast %5 : vector<1x32xf32> to vector<16x32xf32>
    %115 = arith.addf %113, %114 : vector<16x32xf32>
    %c0_29 = arith.constant 0 : index
    %c0_30 = arith.constant 0 : index
    %116 = vector.load %arg7[%c0_29, %c0_30] : memref<32x64xf32, #tpu.memory_space<vmem>>, vector<32x64xf32>
    %cst_31 = arith.constant dense<0.000000e+00> : vector<16x64xf32>
    %117 = tpu.matmul %115, %116, %cst_31 {dimension_numbers = #tpu.dot_dimension_numbers<[1], [0], [0], [1], [0, 0, 1, 1], [], []>} : vector<16x32xf32>, vector<32x64xf32>, vector<16x64xf32> -> vector<16x64xf32>
    %c0_32 = arith.constant 0 : index
    %c0_33 = arith.constant 0 : index
    %118 = vector.load %arg8[%c0_32, %c0_33] : memref<1x64xf32, #tpu.memory_space<vmem>>, vector<1x64xf32>
    %119 = vector.broadcast %118 : vector<1x64xf32> to vector<16x64xf32>
    %120 = arith.addf %117, %119 : vector<16x64xf32>
    %cst_34 = arith.constant 0.000000e+00 : f32
    %121 = vector.broadcast %cst_34 : f32 to vector<16x64xf32>
    %122 = arith.maximumf %120, %121 : vector<16x64xf32>
    %c0_35 = arith.constant 0 : index
    %c0_36 = arith.constant 0 : index
    %123 = vector.load %arg9[%c0_35, %c0_36] : memref<64x32xf32, #tpu.memory_space<vmem>>, vector<64x32xf32>
    %cst_37 = arith.constant dense<0.000000e+00> : vector<16x32xf32>
    %124 = tpu.matmul %122, %123, %cst_37 {dimension_numbers = #tpu.dot_dimension_numbers<[1], [0], [0], [1], [0, 0, 1, 1], [], []>} : vector<16x64xf32>, vector<64x32xf32>, vector<16x32xf32> -> vector<16x32xf32>
    %125 = vector.broadcast %6 : vector<1x32xf32> to vector<16x32xf32>
    %126 = arith.addf %124, %125 : vector<16x32xf32>
    %127 = arith.addf %115, %126 : vector<16x32xf32>
    %cst_38 = arith.constant dense<0.000000e+00> : vector<16xf32>
    %128 = vector.multi_reduction <add>, %127, %cst_38 [1] : vector<16x32xf32> to vector<16xf32>
    %129 = vector.shape_cast %128 : vector<16xf32> to vector<16x1xf32>
    %cst_39 = arith.constant 3.200000e+01 : f32
    %130 = vector.broadcast %cst_39 : f32 to vector<16x1xf32>
    %131 = arith.divf %129, %130 : vector<16x1xf32>
    %132 = vector.broadcast %131 : vector<16x1xf32> to vector<16x32xf32>
    %133 = arith.subf %127, %132 : vector<16x32xf32>
    %134 = arith.mulf %133, %133 : vector<16x32xf32>
    %cst_40 = arith.constant dense<0.000000e+00> : vector<16xf32>
    %135 = vector.multi_reduction <add>, %134, %cst_40 [1] : vector<16x32xf32> to vector<16xf32>
    %136 = vector.shape_cast %135 : vector<16xf32> to vector<16x1xf32>
    %cst_41 = arith.constant 3.200000e+01 : f32
    %137 = vector.broadcast %cst_41 : f32 to vector<16x1xf32>
    %138 = arith.divf %136, %137 : vector<16x1xf32>
    %139 = vector.broadcast %131 : vector<16x1xf32> to vector<16x32xf32>
    %140 = arith.subf %127, %139 : vector<16x32xf32>
    %cst_42 = arith.constant 9.99999974E-6 : f32
    %141 = vector.broadcast %cst_42 : f32 to vector<16x1xf32>
    %142 = arith.addf %138, %141 : vector<16x1xf32>
    %143 = math.sqrt %142 : vector<16x1xf32>
    %144 = vector.broadcast %143 : vector<16x1xf32> to vector<16x32xf32>
    %145 = arith.divf %140, %144 : vector<16x32xf32>
    %146 = vector.broadcast %7 : vector<1x32xf32> to vector<16x32xf32>
    %147 = arith.mulf %145, %146 : vector<16x32xf32>
    %148 = vector.broadcast %8 : vector<1x32xf32> to vector<16x32xf32>
    %149 = arith.addf %147, %148 : vector<16x32xf32>
    %150 = vector.shape_cast %149 : vector<16x32xf32> to vector<2x8x32xf32>
    %c0_43 = arith.constant 0 : index
    %c0_44 = arith.constant 0 : index
    %c0_45 = arith.constant 0 : index
    %151 = vector.load %arg11[%c0_43, %c0_44, %c0_45] : memref<2x8x32xf32, #tpu.memory_space<vmem>>, vector<2x8x32xf32>
    tpu.vector_store %arg11[%c0_43, %c0_44, %c0_45], %150 {strides = array<i32>} : memref<2x8x32xf32, #tpu.memory_space<vmem>>, vector<2x8x32xf32>,
    return
  }
  func.func @transform_0(%arg0: i32) -> (i32, i32, i32) {
    %c0_i32 = arith.constant 0 : i32
    %c0_i32_0 = arith.constant 0 : i32
    %c0_i32_1 = arith.constant 0 : i32
    return %arg0, %c0_i32, %c0_i32_0 : i32, i32, i32
  }
  func.func @transform_1(%arg0: i32) -> (i32, i32, i32) {
    %c0_i32 = arith.constant 0 : i32
    %c0_i32_0 = arith.constant 0 : i32
    %c0_i32_1 = arith.constant 0 : i32
    return %arg0, %c0_i32, %c0_i32_0 : i32, i32, i32
  }
  func.func @transform_2(%arg0: i32) -> (i32, i32, i32) {
    %c0_i32 = arith.constant 0 : i32
    %c0_i32_0 = arith.constant 0 : i32
    %c0_i32_1 = arith.constant 0 : i32
    return %arg0, %c0_i32, %c0_i32_0 : i32, i32, i32
  }
  func.func @transform_3(%arg0: i32) -> (i32, i32) {
    %c0_i32 = arith.constant 0 : i32
    %c0_i32_0 = arith.constant 0 : i32
    %c0_i32_1 = arith.constant 0 : i32
    return %c0_i32, %c0_i32_0 : i32, i32
  }
  func.func @transform_4(%arg0: i32) -> (i32, i32) {
    %c0_i32 = arith.constant 0 : i32
    %c0_i32_0 = arith.constant 0 : i32
    %c0_i32_1 = arith.constant 0 : i32
    return %c0_i32, %c0_i32_0 : i32, i32
  }
  func.func @transform_5(%arg0: i32) -> (i32, i32) {
    %c0_i32 = arith.constant 0 : i32
    %c0_i32_0 = arith.constant 0 : i32
    %c0_i32_1 = arith.constant 0 : i32
    return %c0_i32, %c0_i32_0 : i32, i32
  }
  func.func @transform_6(%arg0: i32) -> (i32, i32) {
    %c0_i32 = arith.constant 0 : i32
    %c0_i32_0 = arith.constant 0 : i32
    %c0_i32_1 = arith.constant 0 : i32
    return %c0_i32, %c0_i32_0 : i32, i32
  }
  func.func @transform_7(%arg0: i32) -> (i32, i32) {
    %c0_i32 = arith.constant 0 : i32
    %c0_i32_0 = arith.constant 0 : i32
    %c0_i32_1 = arith.constant 0 : i32
    return %c0_i32, %c0_i32_0 : i32, i32
  }
  func.func @transform_8(%arg0: i32) -> (i32, i32) {
    %c0_i32 = arith.constant 0 : i32
    %c0_i32_0 = arith.constant 0 : i32
    %c0_i32_1 = arith.constant 0 : i32
    return %c0_i32, %c0_i32_0 : i32, i32
  }
  func.func @transform_9(%arg0: i32) -> (i32, i32) {
    %c0_i32 = arith.constant 0 : i32
    %c0_i32_0 = arith.constant 0 : i32
    %c0_i32_1 = arith.constant 0 : i32
    return %c0_i32, %c0_i32_0 : i32, i32
  }
  func.func @transform_10(%arg0: i32) -> (i32, i32, i32) {
    %c0_i32 = arith.constant 0 : i32
    %c0_i32_0 = arith.constant 0 : i32
    %c0_i32_1 = arith.constant 0 : i32
    return %arg0, %c0_i32, %c0_i32_0 : i32, i32, i32
  }
}

</mosaic_0001>

<bundles_post_ra>
// kernel: tpu_custom_call.1
= control target key start
LH: loop header
LB: loop body
LE: loop exit
PB: predicated region body
PF: predicated region fallthrough
CT: control target
= control target key end

     0   :  { %15 = vsyncpa [#allocation3], 0  ;;  %s1793_s0 = inlined_call_operand.hbm [shape: f32[2,8,32], index: 0, kind: input, shape index: {}]   ;;  %s1794_s1 = inlined_call_operand.hbm [shape: f32[2,8,32], index: 1, kind: input, shape index: {}]   ;;  %s1795_s2 = inlined_call_operand.hbm [shape: f32[2,8,32], index: 2, kind: input, shape index: {}]   ;;  %s1796_s3 = inlined_call_operand.vmem [shape: f32[32,32], index: 3, kind: input, shape index: {}]   ;;  %s1797_s4 = inlined_call_operand.vmem [shape: f32[32,32], index: 4, kind: input, shape index: {}]   ;;  %s1798_s5 = inlined_call_operand.vmem [shape: f32[32,32], index: 5, kind: input, shape index: {}]   ;;  %s1799_s6 = inlined_call_operand.hbm [shape: f32[32,64], index: 6, kind: input, shape index: {}]   ;;  %s1800_s7 = inlined_call_operand.vmem [shape: f32[1,64], index: 7, kind: input, shape index: {}]   ;;  %s1801_s8 = inlined_call_operand.vmem [shape: f32[64,32], index: 8, kind: input, shape index: {}]   ;;  %s1802_s9 = inlined_call_operand.hbm [shape: f32[8,32], index: 9, kind: input, shape index: {}]   ;;  %s1803_s10 = inlined_call_operand.hbm [shape: f32[2,8,32], index: 10, kind: output, shape index: {}]  }
   0x1   :  { %16 = vsyncpa [#allocation6], 0 }
   0x2   :  { %17 = vsyncpa [#allocation9], 0 }
   0x3   :  { %18 = vsyncpa [#allocation4], 0  ;;  %s36_s15 = sshll.u32 %s1794_s1, 4  ;;  %s1436_s16 = smov [#allocation5]   ;;  %s37_s15 = int_to_ptr.hbm [resolvable:$true] %s36_s15 }
   0x4   :  { %s38_s17 = sshll.u32 %s1436_s16, 4  ;;  %s68_s20 = sshll.u32 %s1799_s6, 4  ;;  %s39_s17 = int_to_ptr.vmem [resolvable:$true] %s38_s17  ;;  %s69_s20 = int_to_ptr.hbm [resolvable:$true] %s68_s20 }
   0x5   :  { %s1437_s21 = smov 128   ;;  %s1438_s22 = smov 8  }
   0x6   :  { %44 = dma.hbm_to_vmem [thread:$0]  %s37_s15, 256, %s39_s17, [#allocation6], %s1437_s21, %s1437_s21, %s1438_s22  }
   0x7   :  { %s1439_s23 = smov [#allocation8]   ;;  %s23_s1 = sshll.u32 %s1793_s0, 4  ;;  %s24_s1 = int_to_ptr.hbm [resolvable:$true] %s23_s1 }
   0x8   :  { %s70_s24 = sshll.u32 %s1439_s23, 4  ;;  %s49_s28 = sshll.u32 %s1795_s2, 4  ;;  %s71_s24 = int_to_ptr.vmem [resolvable:$true] %s70_s24  ;;  %s50_s28 = int_to_ptr.hbm [resolvable:$true] %s49_s28 }
   0x9   :  { %76 = dma.hbm_to_vmem [thread:$0]  %s69_s20, 512, %s71_s24, [#allocation9], %s1437_s21, %s1437_s21, %s1438_s22  }
   0xa   :  { %s1440_s29 = smov [#allocation2]   ;;  %s1441_s11 = smov [#allocation7]  }
   0xb   :  { %s25_s30 = sshll.u32 %s1440_s29, 4  ;;  %s51_s0 = sshll.u32 %s1441_s11, 4  ;;  %s26_s30 = int_to_ptr.vmem [resolvable:$true] %s25_s30  ;;  %s52_s0 = int_to_ptr.vmem [resolvable:$true] %s51_s0 }
   0xc   :  { %31 = dma.hbm_to_vmem [thread:$0]  %s24_s1, 256, %s26_s30, [#allocation3], %s1437_s21, %s1437_s21, %s1438_s22  }
   0xd   :  { %s86_s14 = sshll.u32 %s1802_s9, 4  ;;  %s1442_s2 = smov [#allocation10]   ;;  %s87_s14 = int_to_ptr.hbm [resolvable:$true] %s86_s14 }
   0xe   :  { %57 = dma.hbm_to_vmem [thread:$0]  %s50_s28, 256, %s52_s0, [#allocation6], %s1437_s21, %s1437_s21, %s1438_s22  }
   0xf   :  { %s88_s15 = sshll.u32 %s1442_s2, 4  ;;  %s89_s15 = int_to_ptr.vmem [resolvable:$true] %s88_s15 }
  0x10   :  { %91 = dma.hbm_to_vmem [thread:$0]  %s87_s14, 128, %s89_s15, [#allocation9]  }
  0x11   :  { %1428 = dma.done.wait [#allocation3], 256  }
  0x12   :  { %1429 = vsyncadd [#allocation3], 4294967040 }
  0x13   :  { %1430 = dma.done.wait [#allocation6], 512  }
  0x14   :  { %1431 = vsyncadd [#allocation6], 4294966784 }
  0x15   :  { %1432 = dma.done.wait [#allocation9], 640  }
  0x16   :  { %1433 = vsyncadd [#allocation9], 4294966656  ;;  %v128_v0 = vld [vmem:[%s1796_s3 + $0x18] sm:$0xff]  ;;  %v127_v1 = vld [vmem:[%s1796_s3 + $0x10] sm:$0xff]  ;;  %vm130_vm0 = vcmask 261120   ;;  %vm256_vm1 = vcmask 64512   ;;  %v113_v30 = vlaneseq }
  0x17   :  { %155 = vmatpush.msra.mxu0 %v128_v0  ;;  %v126_v2 = vld [vmem:[%s1796_s3 + $0x8] sm:$0xff]  ;;  %v125_v3 = vld [vmem:[%s1796_s3] sm:$0xff]  ;;  %v121_v6 = vld [vmem:[#allocation5] sm:$0xff]  ;;  %s1443_s3 = smov 120   ;;  %s1444_s25 = smov 112  }
  0x18   :  { %v1544_v4 = vld [vmem:[#allocation2] sm:$0xff]  ;;  %v1548_v5 = vld [vmem:[#allocation2 + $0x8] sm:$0xff]  ;;  %v122_v7 = vld [vmem:[#allocation5 + $0x8] sm:$0xff]  ;;  %s1445_s26 = smov 104   ;;  %v114_v33 = vshrl.u32 %v113_v30, 7  ;;  %v116_v34 = vand.u32 127, %v113_v30 }
  0x19   :  { %156 = vmatpush.msra.mxu0 %v127_v1  ;;  %v1554_v9 = vld [vmem:[#allocation10] sm:$0xff]  ;;  %v177_v20 = vld [vmem:[%s1797_s4 + $0x18] sm:$0xff]  ;;  %v175_v22 = vld [vmem:[%s1797_s4 + $0x8] sm:$0xff]  ;;  %s1447_s12 = smov 16   ;;  %s1162_s2 = sshll.u32 %s1803_s10, 4  ;;  %s1163_s2 = int_to_ptr.hbm [resolvable:$true] %s1162_s2 }
  0x1a   :  { %v129_v10 = vperm.slane %v1554_v9, 0  ;;  %v176_v21 = vld [vmem:[%s1797_s4 + $0x10] sm:$0xff]  ;;  %197 = vmatpush.msra.mxu1 %v177_v20  ;;  %v174_v23 = vld [vmem:[%s1797_s4] sm:$0xff]  ;;  %v124_v25 = vld [vmem:[#allocation7 + $0x8] sm:$0xff]  ;;  %v117_v35 = vadd.s32 1, %v114_v33  ;;  %v178_v49 = vperm.slane %v1554_v9, 1 }
  0x1b   :  { %157 = vmatpush.msra.mxu0 %v126_v2  ;;  %v123_v24 = vld [vmem:[#allocation7] sm:$0xff]  ;;  %s1446_s4 = smov 24  }
  0x1c   :  { %198 = vmatpush.msra.mxu1 %v176_v21  ;;  %vm1595_vm2 = vcmp.lt.s32.totalorder %v116_v34, %v117_v35 }
  0x1d   :  { %158 = vmatpush.msra.mxu0 %v125_v3 }
  0x1e   :  { %1177 = vmatmul.msk.f32.vlgmr.msra.gmra.mxu0 %vm130_vm0, %v1544_v4  ;;  %199 = vmatpush.msra.mxu1 %v175_v22 }
  0x20   :  { %200 = vmatpush.msra.mxu1 %v174_v23 }
  0x21   :  { %1181 = vmatmul.msk.f32.vlgmr.msra.gmra.mxu1 %vm130_vm0, %v123_v24 }
  0x26   :  { %1178 = vmatmul.msk.f32.gmra.mxu0 %vm130_vm0, %v1548_v5 }
  0x29   :  { %1182 = vmatmul.msk.f32.gmra.mxu1 %vm130_vm0, %v124_v25 }
  0x2e   :  { %1179 = vmatmul.msk.f32.gmra.mxu0 %vm130_vm0, %v121_v6 }
  0x36   :  { %1180 = vmatmul.msk.f32.gmra.mxu0 %vm130_vm0, %v122_v7 }
  0x9b   :  { %v160_v8 = vpop.f32.mrf.mxu0 }
  0x9c   :  { %v161_v14 = vadd.f32 %v160_v8, %v129_v10 }
  0x9e   :  { %v172_v17 = vmul.f32 0.35355338, %v161_v14  ;;  %v202_v50 = vpop.f32.mrf.mxu1 }
  0x9f   :  { %v1610_v51 = vadd.f32 %v202_v50, %v178_v49 }
  0xa3   :  { %v163_v11 = vpop.f32.mrf.mxu0 }
  0xa4   :  { %v164_v12 = vadd.f32 %v163_v11, %v129_v10 }
  0xa6   :  { %v173_v13 = vmul.f32 0.35355338, %v164_v12  ;;  %v205_v52 = vpop.f32.mrf.mxu1 }
  0xa7   :  { %v1613_v53 = vadd.f32 %v205_v52, %v178_v49 }
  0xa8   :  { %212 = vrot.lane.b32.xlu2 %v173_v13, %s1443_s3 }
  0xab   :  { %v166_v15 = vpop.f32.mrf.mxu0 }
  0xac   :  { %v167_v16 = vadd.f32 %v166_v15, %v129_v10 }
  0xae   :  { %228 = vrot.lane.b32.xlu1 %v167_v16, %s1444_s25  ;;  %224 = vrot.lane.b32.xlu0 %v167_v16, %s1443_s3 }
  0xaf   :  { %1183 = vmatpush.xpose.msk.msra.mxu3 %vm256_vm1, %v167_v16 }
  0xb0   :  { %214 = vrot.lane.b32.xlu2 %v172_v17, %s1444_s25 }
  0xb2   :  { %1184 = vmatmul.msk.f32.vlgmr.msra.gmra.mxu3 %vm256_vm1, %v172_v17 }
  0xb3   :  { %v169_v18 = vpop.f32.mrf.mxu0 }
  0xb4   :  { %v170_v19 = vadd.f32 %v169_v18, %v129_v10 }
  0xb6   :  { %226 = vrot.lane.b32.xlu1 %v170_v19, %s1443_s3  ;;  %1185 = vmatpush.xpose.msk.msrb.mxu3 %vm256_vm1, %v170_v19 }
  0xb7   :  { %210 = vrot.lane.b32.xlu0 %v172_v17, %s1443_s3 }
  0xb8   :  { %218 = vrot.lane.b32.xlu2 %v172_v17, %s1445_s26 }
  0xba   :  { %1186 = vmatmul.msk.f32.vlgmr.msrb.gmra.mxu3 %vm256_vm1, %v173_v13 }
  0xbe   :  { %234 = vrot.lane.b32.xlu1 %v170_v19, %s1445_s26 }
  0xbf   :  { %232 = vrot.lane.b32.xlu0 %v167_v16, %s1445_s26  ;;  %v1227_v16 = vpack.i.bf16 %v1613_v53, %v1610_v51 }
  0xc0   :  { %216 = vrot.lane.b32.xlu2 %v173_v13, %s1444_s25 }
  0xc6   :  { %230 = vrot.lane.b32.xlu1 %v170_v19, %s1444_s25 }
  0xc7   :  { %220 = vrot.lane.b32.xlu0 %v173_v13, %s1445_s26 }
 0x102   :  { %v213_v26 = vpop.permute.xlu2 %212 }
 0x10a   :  { %v215_v29 = vpop.permute.xlu2 %214 }
 0x112   :  { %v219_v37 = vpop.permute.xlu2 %218 }
 0x11a   :  { %v217_v45 = vpop.permute.xlu2 %216 }
 0x120   :  { %v229_v27 = vpop.permute.xlu1 %228  ;;  %v225_v28 = vpop.permute.xlu0 %224 }
 0x121   :  { %1187 = vmatpush.xpose.msk.msra.mxu2 %vm256_vm1, %v225_v28 }
 0x125   :  { %1191 = vmatpush.xpose.msk.msrb.mxu2 %vm256_vm1, %v229_v27 }
 0x128   :  { %v227_v31 = vpop.permute.xlu1 %226 }
 0x129   :  { %v211_v32 = vpop.permute.xlu0 %210  ;;  %1189 = vmatpush.xpose.msk.msra.mxu3 %vm256_vm1, %v227_v31 }
 0x12a   :  { %1188 = vmatmul.msk.f32.vlgmr.msra.gmra.mxu2 %vm256_vm1, %v211_v32 }
 0x12c   :  { %1190 = vmatmul.msk.f32.vlgmr.msra.gmra.mxu3 %vm256_vm1, %v213_v26 }
 0x130   :  { %v235_v36 = vpop.permute.xlu1 %234 }
 0x131   :  { %v233_v38 = vpop.permute.xlu0 %232  ;;  %1197 = vmatpush.xpose.msk.msra.mxu2 %vm256_vm1, %v235_v36 }
 0x132   :  { %1192 = vmatmul.msk.f32.vlgmr.msrb.gmra.mxu2 %vm256_vm1, %v215_v29  ;;  %1195 = vmatpush.xpose.msk.msrb.mxu1 %vm256_vm1, %v233_v38 }
 0x135   :  { %v278_v40 = vpop.f32.mrf.mxu3  ;;  %1196 = vmatmul.msk.f32.vlgmr.msrb.gmra.mxu1 %vm256_vm1, %v219_v37 }
 0x136   :  { %v451_v41 = vsel %vm1595_vm2, %v278_v40, -1e+32  ;;  %692 = vmatpush.msra.mxu1 %v1613_v53 }
 0x137   :  { %v459_v42 = vsel %vm256_vm1, %v451_v41, -inf }
 0x138   :  { %460 = vmax.xlane.f32.xlu0 %v459_v42  ;;  %v231_v43 = vpop.permute.xlu1 %230 }
 0x139   :  { %v221_v44 = vpop.permute.xlu0 %220  ;;  %1193 = vmatpush.xpose.msk.msrb.mxu3 %vm256_vm1, %v231_v43 }
 0x13a   :  { %1198 = vmatmul.msk.f32.vlgmr.msra.gmra.mxu2 %vm256_vm1, %v221_v44 }
 0x13c   :  { %1194 = vmatmul.msk.f32.vlgmr.msrb.gmra.mxu3 %vm256_vm1, %v217_v45 }
 0x13d   :  { %v302_v46 = vpop.f32.mrf.mxu3  ;;  %669 = vmatpush.msra.mxu3 %v1610_v51 }
 0x13e   :  { %v452_v47 = vsel %vm1595_vm2, %v302_v46, -1e+32 }
 0x13f   :  { %v462_v48 = vsel %vm256_vm1, %v452_v47, -inf }
 0x140   :  { %463 = vmax.xlane.f32.xlu0 %v462_v48 }
 0x1ab   :  { %v461_v54 = vpop.xlane.xlu0 %460 }
 0x1ac   :  { %v483_v56 = vsub.f32 %v451_v41, %v461_v54 }
 0x1ad   :  { %v326_v55 = vpop.f32.mrf.mxu2 }
 0x1ae   :  { %v453_v57 = vsel %vm1595_vm2, %v326_v55, -1e+32  ;;  %v491_v59 = vmul.f32 1.442695, %v483_v56 }
 0x1af   :  { %v465_v58 = vsel %vm256_vm1, %v453_v57, -inf  ;;  %v350_v0 = vpop.f32.mrf.mxu3 }
 0x1b0   :  { %466 = vmax.xlane.f32.xlu1 %v465_v58  ;;  %1233 = vpow2.f32 %v491_v59  ;;  %v454_v3 = vsel %vm1595_vm2, %v350_v0, -1e+32 }
 0x1b1   :  { %v468_v7 = vsel %vm256_vm1, %v454_v3, -inf }
 0x1b2   :  { %v422_v60 = vpop.f32.mrf.mxu1 }
 0x1b3   :  { %v457_v61 = vsel %vm1595_vm2, %v422_v60, -1e+32  ;;  %v464_v17 = vpop.xlane.xlu0 %463 }
 0x1b4   :  { %v477_v62 = vsel %vm256_vm1, %v457_v61, -inf  ;;  %v484_v18 = vsub.f32 %v452_v47, %v464_v17 }
 0x1b5   :  { %v374_v63 = vpop.f32.mrf.mxu2  ;;  %478 = vmax.xlane.f32.xlu2 %v477_v62 }
 0x1b6   :  { %v455_v1 = vsel %vm1595_vm2, %v374_v63, -1e+32  ;;  %v1627_v6 = vpop.eup %1233  ;;  %v493_v19 = vmul.f32 1.442695, %v484_v18 }
 0x1b7   :  { %v471_v2 = vsel %vm256_vm1, %v455_v1, -inf  ;;  %v507_v10 = vsel %vm256_vm1, %v1627_v6, 0.0 }
 0x1b8   :  { %472 = vmax.xlane.f32.xlu1 %v471_v2  ;;  %1235 = vpow2.f32 %v493_v19 }
 0x1bd   :  { %469 = vmax.xlane.f32.xlu2 %v468_v7  ;;  %v446_v8 = vpop.f32.mrf.mxu2 }
 0x1be   :  { %v458_v13 = vsel %vm1595_vm2, %v446_v8, -1e+32  ;;  %v1643_v20 = vpop.eup %1235 }
 0x1bf   :  { %v398_v11 = vpop.f32.mrf.mxu3  ;;  %v480_v15 = vsel %vm256_vm1, %v458_v13, -inf  ;;  %v510_v21 = vsel %vm256_vm1, %v1643_v20, 0.0 }
 0x1c0   :  { %508 = vadd.xlane.f32.xlu1 %v507_v10  ;;  %v456_v12 = vsel %vm1595_vm2, %v398_v11, -1e+32 }
 0x1c1   :  { %v474_v14 = vsel %vm256_vm1, %v456_v12, -inf }
 0x1c2   :  { %475 = vmax.xlane.f32.xlu0 %v474_v14 }
 0x1c5   :  { %481 = vmax.xlane.f32.xlu2 %v480_v15 }
 0x1d9   :  { %250 = vrot.lane.b32.xlu1 %v1610_v51, %s1445_s26 }
 0x1dd   :  { %1228 = vrot.lane.b32.xlu2 %v1227_v16, %s1443_s3 }
 0x206   :  { %511 = vadd.xlane.f32.xlu2 %v510_v21 }
 0x223   :  { %v467_v22 = vpop.xlane.xlu1 %466 }
 0x224   :  { %v485_v23 = vsub.f32 %v453_v57, %v467_v22 }
 0x226   :  { %v495_v24 = vmul.f32 1.442695, %v485_v23 }
 0x228   :  { %1237 = vpow2.f32 %v495_v24  ;;  %v479_v25 = vpop.xlane.xlu2 %478 }
 0x229   :  { %v489_v26 = vsub.f32 %v457_v61, %v479_v25 }
 0x22b   :  { %v503_v27 = vmul.f32 1.442695, %v489_v26  ;;  %v473_v28 = vpop.xlane.xlu1 %472 }
 0x22c   :  { %v487_v34 = vsub.f32 %v455_v1, %v473_v28 }
 0x22d   :  { %1239 = vpow2.f32 %v503_v27 }
 0x22e   :  { %v1647_v29 = vpop.eup %1237  ;;  %v499_v38 = vmul.f32 1.442695, %v487_v34 }
 0x22f   :  { %v513_v30 = vsel %vm256_vm1, %v1647_v29, 0.0 }
 0x230   :  { %514 = vadd.xlane.f32.xlu2 %v513_v30  ;;  %v470_v31 = vpop.xlane.xlu2 %469 }
 0x231   :  { %v486_v32 = vsub.f32 %v454_v3, %v470_v31 }
 0x233   :  { %v1651_v33 = vpop.eup %1239  ;;  %v497_v35 = vmul.f32 1.442695, %v486_v32  ;;  %v509_v36 = vpop.xlane.xlu1 %508 }
 0x234   :  { %1241 = vrcp.f32 %v509_v36  ;;  %v525_v37 = vsel %vm256_vm1, %v1651_v33, 0.0  ;;  %v542_v49 = vand.u32 2147483648, %v509_v36  ;;  %v540_v52 = vand.u32 2147483647, %v509_v36 }
 0x235   :  { %1243 = vpow2.f32 %v497_v35  ;;  %526 = vadd.xlane.f32.xlu1 %v525_v37  ;;  %v476_v39 = vpop.xlane.xlu0 %475  ;;  %vm536_vm4 = vweird.f32 %v509_v36 }
 0x236   :  { %1245 = vpow2.f32 %v499_v38  ;;  %v488_v45 = vsub.f32 %v456_v12, %v476_v39  ;;  %v543_v60 = vor.u32 1.1754944e-38, %v542_v49  ;;  %vm541_vm6 = vcmp.eq.f32.partialorder %v540_v52, 8.507059e+37 }
 0x238   :  { %v482_v40 = vpop.xlane.xlu2 %481  ;;  %v501_v54 = vmul.f32 1.442695, %v488_v45 }
 0x239   :  { %v490_v41 = vsub.f32 %v458_v13, %v482_v40 }
 0x23a   :  { %v1242_v42 = vpop.eup %1241 }
 0x23b   :  { %v1655_v43 = vpop.eup %1243  ;;  %v532_v44 = vmul.f32 %v1242_v42, %v509_v36  ;;  %v505_v46 = vmul.f32 1.442695, %v490_v41  ;;  %vm537_vm3 = vweird.f32 %v1242_v42 }
 0x23c   :  { %v516_v47 = vsel %vm256_vm1, %v1655_v43, 0.0  ;;  %v1659_v56 = vpop.eup %1245  ;;  %vm538_vm5 = vmor %vm536_vm4, %vm537_vm3 }
 0x23d   :  { %v533_v48 = vsub.f32 1.0, %v532_v44  ;;  %1247 = vpow2.f32 %v505_v46  ;;  %517 = vadd.xlane.f32.xlu0 %v516_v47  ;;  %v519_v1 = vsel %vm256_vm1, %v1659_v56, 0.0 }
 0x23e   :  { %1249 = vpow2.f32 %v501_v54 }
 0x23f   :  { %v534_v50 = vmul.f32 %v1242_v42, %v533_v48 }
 0x240   :  { %v1229_v55 = vpop.permute.xlu2 %1228 }
 0x241   :  { %v535_v57 = vadd.f32 %v1242_v42, %v534_v50  ;;  %v1231_v58 = vunpack.i.h.bf16 %v1229_v55  ;;  %v1230_v59 = vunpack.i.l.bf16 %v1229_v55 }
 0x243   :  { %v1661_v61 = vpop.eup %1247  ;;  %v539_v62 = vsel %vm538_vm5, %v1242_v42, %v535_v57  ;;  %715 = vmatpush.msrb.mxu2 %v1230_v59  ;;  %738 = vmatpush.msrb.mxu3 %v1231_v58 }
 0x244   :  { %v544_v63 = vsel %vm541_vm6, %v543_v60, %v539_v62  ;;  %v528_v0 = vsel %vm256_vm1, %v1661_v61, 0.0  ;;  %v1671_v3 = vpop.eup %1249 }
 0x245   :  { %529 = vadd.xlane.f32.xlu1 %v528_v0  ;;  %520 = vadd.xlane.f32.xlu0 %v519_v1  ;;  %v545_v2 = vmul.f32 %v1627_v6, %v544_v63  ;;  %v522_v8 = vsel %vm256_vm1, %v1671_v3, 0.0 }
 0x247   :  { %1199 = vmatmul.msk.f32.vlgmr.msra.gmra.mxu3 %vm256_vm1, %v545_v2 }
 0x248   :  { %252 = vrot.lane.b32.xlu2 %v1613_v53, %s1445_s26 }
 0x24b   :  { %v251_v7 = vpop.permute.xlu1 %250 }
 0x24c   :  { %807 = vmatpush.msra.mxu2 %v251_v7 }
 0x24d   :  { %523 = vadd.xlane.f32.xlu0 %v522_v8 }
 0x25e   :  { %246 = vrot.lane.b32.xlu1 %v1613_v53, %s1444_s25 }
 0x261   :  { %244 = vrot.lane.b32.xlu0 %v1610_v51, %s1444_s25 }
 0x279   :  { %v512_v6 = vpop.xlane.xlu2 %511 }
 0x27a   :  { %1251 = vrcp.f32 %v512_v6  ;;  %v557_v13 = vand.u32 2147483648, %v512_v6  ;;  %v555_v15 = vand.u32 2147483647, %v512_v6  ;;  %vm551_vm8 = vweird.f32 %v512_v6 }
 0x27c   :  { %v558_v17 = vor.u32 1.1754944e-38, %v557_v13  ;;  %vm556_vm10 = vcmp.eq.f32.partialorder %v555_v15, 8.507059e+37 }
 0x280   :  { %v1252_v10 = vpop.eup %1251 }
 0x281   :  { %v547_v11 = vmul.f32 %v1252_v10, %v512_v6  ;;  %vm552_vm7 = vweird.f32 %v1252_v10 }
 0x282   :  { %vm553_vm9 = vmor %vm551_vm8, %vm552_vm7 }
 0x283   :  { %v548_v12 = vsub.f32 1.0, %v547_v11 }
 0x285   :  { %v549_v14 = vmul.f32 %v1252_v10, %v548_v12 }
 0x287   :  { %v550_v16 = vadd.f32 %v1252_v10, %v549_v14 }
 0x289   :  { %v554_v18 = vsel %vm553_vm9, %v1252_v10, %v550_v16 }
 0x28a   :  { %v559_v19 = vsel %vm556_vm10, %v558_v17, %v554_v18 }
 0x28b   :  { %v560_v53 = vmul.f32 %v1643_v20, %v559_v19 }
 0x28d   :  { %1200 = vmatmul.msk.f32.vlgmr.msra.gmra.mxu1 %vm256_vm1, %v560_v53 }
 0x2a3   :  { %v515_v51 = vpop.xlane.xlu2 %514 }
 0x2a4   :  { %1253 = vrcp.f32 %v515_v51  ;;  %v572_v26 = vand.u32 2147483648, %v515_v51  ;;  %v570_v28 = vand.u32 2147483647, %v515_v51  ;;  %vm566_vm12 = vweird.f32 %v515_v51 }
 0x2a6   :  { %v573_v34 = vor.u32 1.1754944e-38, %v572_v26  ;;  %vm571_vm14 = vcmp.eq.f32.partialorder %v570_v28, 8.507059e+37 }
 0x2a8   :  { %v527_v21 = vpop.xlane.xlu1 %526 }
 0x2a9   :  { %1255 = vrcp.f32 %v527_v21  ;;  %v632_v38 = vand.u32 2147483648, %v527_v21  ;;  %v630_v40 = vand.u32 2147483647, %v527_v21  ;;  %vm626_vm2 = vweird.f32 %v527_v21 }
 0x2aa   :  { %v1254_v22 = vpop.eup %1253 }
 0x2ab   :  { %v562_v23 = vmul.f32 %v1254_v22, %v515_v51  ;;  %v253_v24 = vpop.permute.xlu2 %252  ;;  %vm567_vm11 = vweird.f32 %v1254_v22  ;;  %v633_v45 = vor.u32 1.1754944e-38, %v632_v38  ;;  %vm631_vm4 = vcmp.eq.f32.partialorder %v630_v40, 8.507059e+37 }
 0x2ac   :  { %830 = vmatpush.msra.mxu3 %v253_v24  ;;  %vm568_vm13 = vmor %vm566_vm12, %vm567_vm11 }
 0x2ad   :  { %v563_v25 = vsub.f32 1.0, %v562_v23 }
 0x2af   :  { %v564_v27 = vmul.f32 %v1254_v22, %v563_v25  ;;  %v1256_v30 = vpop.eup %1255 }
 0x2b0   :  { %v518_v31 = vpop.xlane.xlu0 %517  ;;  %v622_v20 = vmul.f32 %v1256_v30, %v527_v21  ;;  %vm627_vm15 = vweird.f32 %v1256_v30 }
 0x2b1   :  { %v565_v32 = vadd.f32 %v1254_v22, %v564_v27  ;;  %1257 = vrcp.f32 %v518_v31  ;;  %vm628_vm3 = vmor %vm626_vm2, %vm627_vm15  ;;  %v587_v54 = vand.u32 2147483648, %v518_v31  ;;  %vm581_vm6 = vweird.f32 %v518_v31 }
 0x2b2   :  { %v623_v36 = vsub.f32 1.0, %v622_v20 }
 0x2b3   :  { %v569_v35 = vsel %vm568_vm13, %v1254_v22, %v565_v32  ;;  %v588_v60 = vor.u32 1.1754944e-38, %v587_v54 }
 0x2b4   :  { %v574_v37 = vsel %vm571_vm14, %v573_v34, %v569_v35  ;;  %v624_v39 = vmul.f32 %v1256_v30, %v623_v36 }
 0x2b5   :  { %v575_v41 = vmul.f32 %v1647_v29, %v574_v37  ;;  %v585_v29 = vand.u32 2147483647, %v518_v31 }
 0x2b6   :  { %v625_v44 = vadd.f32 %v1256_v30, %v624_v39 }
 0x2b7   :  { %v1258_v42 = vpop.eup %1257  ;;  %1201 = vmatmul.msk.f32.vlgmr.msrb.gmra.mxu2 %vm256_vm1, %v575_v41  ;;  %vm586_vm8 = vcmp.eq.f32.partialorder %v585_v29, 8.507059e+37 }
 0x2b8   :  { %v577_v46 = vmul.f32 %v1258_v42, %v518_v31  ;;  %v530_v47 = vpop.xlane.xlu1 %529  ;;  %v521_v48 = vpop.xlane.xlu0 %520  ;;  %v629_v49 = vsel %vm628_vm3, %v1256_v30, %v625_v44  ;;  %vm582_vm5 = vweird.f32 %v1258_v42 }
 0x2b9   :  { %1259 = vrcp.f32 %v530_v47  ;;  %v634_v50 = vsel %vm631_vm4, %v633_v45, %v629_v49  ;;  %vm583_vm7 = vmor %vm581_vm6, %vm582_vm5  ;;  %v647_v6 = vand.u32 2147483648, %v530_v47  ;;  %v645_v12 = vand.u32 2147483647, %v530_v47  ;;  %v870_v45 = vld [vmem:[%s1798_s5 + $0x18] sm:$0xff] }
 0x2ba   :  { %v578_v52 = vsub.f32 1.0, %v577_v46  ;;  %1261 = vrcp.f32 %v521_v48  ;;  %v635_v57 = vmul.f32 %v1651_v33, %v634_v50  ;;  %vm641_vm10 = vweird.f32 %v530_v47  ;;  %v869_v46 = vld [vmem:[%s1798_s5 + $0x10] sm:$0xff] }
 0x2bb   :  { %v648_v16 = vor.u32 1.1754944e-38, %v647_v6  ;;  %vm646_vm12 = vcmp.eq.f32.partialorder %v645_v12, 8.507059e+37  ;;  %v602_v51 = vand.u32 2147483648, %v521_v48  ;;  %vm596_vm14 = vweird.f32 %v521_v48 }
 0x2bc   :  { %v579_v55 = vmul.f32 %v1258_v42, %v578_v52  ;;  %v600_v22 = vand.u32 2147483647, %v521_v48  ;;  %v1448_v12 = vmov 32.0  }
 0x2bd   :  { %v603_v28 = vor.u32 1.1754944e-38, %v602_v51 }
 0x2be   :  { %v580_v58 = vadd.f32 %v1258_v42, %v579_v55  ;;  %vm601_vm4 = vcmp.eq.f32.partialorder %v600_v22, 8.507059e+37 }
 0x2bf   :  { %v1260_v59 = vpop.eup %1259  ;;  %1205 = vmatmul.msk.f32.vlgmr.msra.gmra.mxu2 %vm256_vm1, %v635_v57 }
 0x2c0   :  { %v1262_v62 = vpop.eup %1261  ;;  %v584_v63 = vsel %vm583_vm7, %v1258_v42, %v580_v58  ;;  %v637_v0 = vmul.f32 %v1260_v59, %v530_v47  ;;  %v524_v1 = vpop.xlane.xlu0 %523  ;;  %vm642_vm9 = vweird.f32 %v1260_v59  ;;  %v868_v47 = vld [vmem:[%s1798_s5 + $0x8] sm:$0xff]  ;;  %vm861_vm7 = vcmask 130048  }
 0x2c1   :  { %v589_v2 = vsel %vm586_vm8, %v588_v60, %v584_v63  ;;  %v592_v7 = vmul.f32 %v1262_v62, %v521_v48  ;;  %1263 = vrcp.f32 %v524_v1  ;;  %vm643_vm11 = vmor %vm641_vm10, %vm642_vm9  ;;  %vm597_vm13 = vweird.f32 %v1262_v62  ;;  %v867_v48 = vld [vmem:[%s1798_s5] sm:$0xff] }
 0x2c2   :  { %v638_v8 = vsub.f32 1.0, %v637_v0  ;;  %v590_v33 = vmul.f32 %v1655_v43, %v589_v2  ;;  %v617_v23 = vand.u32 2147483648, %v524_v1  ;;  %vm1688_vm15 = vmor %vm596_vm14, %vm597_vm13  ;;  %v615_v26 = vand.u32 2147483647, %v524_v1 }
 0x2c3   :  { %v593_v10 = vsub.f32 1.0, %v592_v7  ;;  %vm611_vm3 = vweird.f32 %v524_v1  ;;  %vm864_vm8 = vcmask 195584   ;;  %v871_v0 = vperm.slane %v1554_v9, 2 }
 0x2c4   :  { %v639_v11 = vmul.f32 %v1260_v59, %v638_v8  ;;  %1202 = vmatmul.msk.f32.vlgmr.msrb.gmra.mxu3 %vm256_vm1, %v590_v33  ;;  %vm616_vm6 = vcmp.eq.f32.partialorder %v615_v26, 8.507059e+37  ;;  %1265 = vrcp.f32 %v1448_v12  ;;  %v995_v26 = vld [vmem:[#allocation8 + $0x18] sm:$0xff] }
 0x2c5   :  { %v594_v13 = vmul.f32 %v1262_v62, %v593_v10 }
 0x2c6   :  { %v640_v14 = vadd.f32 %v1260_v59, %v639_v11 }
 0x2c7   :  { %v1264_v15 = vpop.eup %1263  ;;  %v595_v53 = vadd.f32 %v1262_v62, %v594_v13 }
 0x2c8   :  { %v644_v17 = vsel %vm643_vm11, %v1260_v59, %v640_v14  ;;  %v607_v18 = vmul.f32 %v1264_v15, %v524_v1  ;;  %vm612_vm2 = vweird.f32 %v1264_v15 }
 0x2c9   :  { %v649_v19 = vsel %vm646_vm12, %v648_v16, %v644_v17  ;;  %v599_v27 = vsel %vm1688_vm15, %v1262_v62, %v595_v53  ;;  %vm613_vm5 = vmor %vm611_vm3, %vm612_vm2 }
 0x2ca   :  { %v608_v21 = vsub.f32 1.0, %v607_v18  ;;  %v650_v43 = vmul.f32 %v1661_v61, %v649_v19  ;;  %v618_v61 = vor.u32 1.1754944e-38, %v617_v23  ;;  %v604_v20 = vsel %vm601_vm4, %v603_v28, %v599_v27  ;;  %v671_v39 = vpop.f32.mrf.mxu3  ;;  %v1266_v13 = vpop.eup %1265  ;;  %v994_v27 = vld [vmem:[#allocation8 + $0x10] sm:$0xff] }
 0x2cb   :  { %v605_v37 = vmul.f32 %v1659_v56, %v604_v20  ;;  %v910_v14 = vmul.f32 32.0, %v1266_v13 }
 0x2cc   :  { %v609_v25 = vmul.f32 %v1264_v15, %v608_v21  ;;  %1206 = vmatmul.msk.f32.vlgmr.msra.gmra.mxu3 %vm256_vm1, %v650_v43 }
 0x2ce   :  { %v610_v30 = vadd.f32 %v1264_v15, %v609_v25 }
 0x2d0   :  { %v614_v31 = vsel %vm613_vm5, %v1264_v15, %v610_v30  ;;  %v247_v32 = vpop.permute.xlu1 %246  ;;  %v911_v15 = vsub.f32 1.0, %v910_v14  ;;  %v993_v30 = vld [vmem:[#allocation8 + $0x8] sm:$0xff] }
 0x2d1   :  { %v619_v34 = vsel %vm616_vm6, %v618_v61, %v614_v31  ;;  %784 = vmatpush.msrb.mxu1 %v247_v32  ;;  %v992_v31 = vld [vmem:[#allocation8] sm:$0xff] }
 0x2d2   :  { %v620_v35 = vmul.f32 %v1671_v3, %v619_v34  ;;  %v912_v16 = vmul.f32 %v1266_v13, %v911_v15 }
 0x2d3   :  { %v245_v36 = vpop.permute.xlu0 %244  ;;  %1018 = vmatpush.msra.mxu1 %v995_v26 }
 0x2d4   :  { %761 = vmatpush.msrb.mxu0 %v245_v36  ;;  %1204 = vmatmul.msk.f32.vlgmr.msrb.gmra.mxu1 %vm256_vm1, %v620_v35  ;;  %v913_v17 = vadd.f32 %v1266_v13, %v912_v16 }
 0x2d5   :  { %1203 = vmatmul.msk.f32.vlgmr.msrb.gmra.mxu0 %vm256_vm1, %v605_v37  ;;  %1019 = vmatpush.msra.mxu1 %v994_v27  ;;  %v1033_v27 = vld [vmem:[%s1801_s8 + $0x10] sm:$0xff] }
 0x2d6   :  { %890 = vmatpush.msra.mxu0 %v870_v45 }
 0x2d7   :  { %1020 = vmatpush.msra.mxu1 %v993_v30  ;;  %v1031_v30 = vld [vmem:[%s1801_s8] sm:$0xff] }
 0x2d8   :  { %891 = vmatpush.msra.mxu0 %v869_v46 }
 0x2d9   :  { %1021 = vmatpush.msra.mxu1 %v992_v31 }
 0x2da   :  { %892 = vmatpush.msra.mxu0 %v868_v47 }
 0x2dc   :  { %893 = vmatpush.msra.mxu0 %v867_v48  ;;  %v1038_v48 = vld [vmem:[%s1801_s8 + $0x38] sm:$0xff] }
 0x2dd   :  { %1055 = vmatpush.msrb.mxu2 %v1038_v48 }
 0x30a   :  { %v694_v3 = vpop.f32.mrf.mxu1 }
 0x33a   :  { %v717_v38 = vpop.f32.mrf.mxu2 }
 0x33b   :  { %837 = vrot.lane.b32.xlu0 %v717_v38, %s1438_s22 }
 0x342   :  { %v809_v40 = vpop.f32.mrf.mxu2 }
 0x343   :  { %853 = vrot.lane.b32.xlu1 %v809_v40, %s1446_s4 }
 0x347   :  { %v740_v41 = vpop.f32.mrf.mxu3 }
 0x348   :  { %839 = vrot.lane.b32.xlu0 %v740_v41, %s1438_s22 }
 0x34f   :  { %v832_v42 = vpop.f32.mrf.mxu3 }
 0x350   :  { %855 = vrot.lane.b32.xlu1 %v832_v42, %s1446_s4 }
 0x351   :  { %v786_v56 = vpop.f32.mrf.mxu1 }
 0x352   :  { %v763_v44 = vpop.f32.mrf.mxu0 }
 0x353   :  { %845 = vrot.lane.b32.xlu2 %v763_v44, %s1447_s12 }
 0x35b   :  { %847 = vrot.lane.b32.xlu2 %v786_v56, %s1447_s12 }
 0x3ad   :  { %v838_v49 = vpop.permute.xlu0 %837  ;;  %v846_v50 = vpop.permute.xlu2 %845 }
 0x3ae   :  { %v859_v52 = vsel %vm256_vm1, %v671_v39, %v838_v49  ;;  %v1037_v49 = vld [vmem:[%s1801_s8 + $0x30] sm:$0xff] }
 0x3af   :  { %v862_v55 = vsel %vm861_vm7, %v859_v52, %v846_v50  ;;  %1056 = vmatpush.msrb.mxu2 %v1037_v49 }
 0x3b5   :  { %v854_v54 = vpop.permute.xlu1 %853  ;;  %v848_v59 = vpop.permute.xlu2 %847 }
 0x3b6   :  { %v865_v29 = vsel %vm864_vm8, %v862_v55, %v854_v54  ;;  %v1036_v55 = vld [vmem:[%s1801_s8 + $0x28] sm:$0xff] }
 0x3b7   :  { %1207 = vmatmul.msk.f32.vlgmr.msra.gmra.mxu0 %vm130_vm0, %v865_v29  ;;  %1057 = vmatpush.msrb.mxu2 %v1036_v55 }
 0x3ba   :  { %v840_v57 = vpop.permute.xlu0 %839 }
 0x3bb   :  { %v860_v58 = vsel %vm256_vm1, %v694_v3, %v840_v57  ;;  %vm914_vm1 = vweird.f32 %v1266_v13 }
 0x3bc   :  { %v863_v62 = vsel %vm861_vm7, %v860_v58, %v848_v59  ;;  %v1722_v18 = vsel %vm914_vm1, %v1266_v13, %v913_v17  ;;  %v1035_v58 = vld [vmem:[%s1801_s8 + $0x20] sm:$0xff]  ;;  %v989_v13 = vperm.slane %v1554_v9, 4  ;;  %vm1040_vm7 = vcmask 523264  }
 0x3bd   :  { %1058 = vmatpush.msrb.mxu2 %v1035_v58 }
 0x3c2   :  { %v856_v60 = vpop.permute.xlu1 %855 }
 0x3c3   :  { %v866_v63 = vsel %vm864_vm8, %v863_v62, %v856_v60 }
 0x3c4   :  { %1208 = vmatmul.msk.f32.gmra.mxu0 %vm130_vm0, %v866_v63 }
 0x434   :  { %v895_v1 = vpop.f32.mrf.mxu0 }
 0x435   :  { %v896_v2 = vadd.f32 %v895_v1, %v871_v0  ;;  %v1034_v1 = vld [vmem:[%s1801_s8 + $0x18] sm:$0xff] }
 0x436   :  { %1059 = vmatpush.msrb.mxu2 %v1034_v1 }
 0x437   :  { %v901_v7 = vadd.f32 %v896_v2, %v1544_v4 }
 0x438   :  { %1060 = vmatpush.msrb.mxu2 %v1033_v27  ;;  %v1283_v27 = vld [vmem:[#allocation10] sm:$0xff] }
 0x439   :  { %v903_v8 = vsel %vm130_vm0, %v901_v7, 0.0 }
 0x43a   :  { %904 = vadd.xlane.f32.xlu0 %v903_v8 }
 0x441   :  { %v898_v6 = vpop.f32.mrf.mxu0 }
 0x442   :  { %v899_v10 = vadd.f32 %v898_v6, %v871_v0 }
 0x444   :  { %v902_v33 = vadd.f32 %v899_v10, %v1548_v5 }
 0x446   :  { %v906_v11 = vsel %vm130_vm0, %v902_v33, 0.0 }
 0x447   :  { %907 = vadd.xlane.f32.xlu2 %v906_v11 }
 0x4ad   :  { %v905_v4 = vpop.xlane.xlu0 %904 }
 0x4ae   :  { %v916_v19 = vmul.f32 %v1722_v18, %v905_v4 }
 0x4b0   :  { %v1725_v53 = vsub.f32 %v901_v7, %v916_v19 }
 0x4b2   :  { %v920_v5 = vmul.f32 %v1725_v53, %v1725_v53 }
 0x4b4   :  { %v922_v51 = vsel %vm130_vm0, %v920_v5, 0.0 }
 0x4b5   :  { %923 = vadd.xlane.f32.xlu1 %v922_v51 }
 0x4ba   :  { %v908_v21 = vpop.xlane.xlu2 %907 }
 0x4bb   :  { %v917_v43 = vmul.f32 %v1722_v18, %v908_v21 }
 0x4bd   :  { %v1731_v22 = vsub.f32 %v902_v33, %v917_v43  ;;  %v986_v33 = vperm.slane %v1554_v9, 3 }
 0x4bf   :  { %v921_v23 = vmul.f32 %v1731_v22, %v1731_v22 }
 0x4c1   :  { %v925_v24 = vsel %vm130_vm0, %v921_v23, 0.0 }
 0x4c2   :  { %926 = vadd.xlane.f32.xlu0 %v925_v24 }
 0x528   :  { %v924_v25 = vpop.xlane.xlu1 %923 }
 0x529   :  { %v928_v28 = vmul.f32 %v924_v25, %v1722_v18 }
 0x52b   :  { %v930_v61 = vadd.f32 1e-05, %v928_v28  ;;  %v1032_v28 = vld [vmem:[%s1801_s8 + $0x8] sm:$0xff] }
 0x52c   :  { %1061 = vmatpush.msrb.mxu2 %v1032_v28  ;;  %v1148_v28 = vperm.slane %v1283_v27, 6 }
 0x52d   :  { %1267 = vrsqrt.f32 %v930_v61  ;;  %vm939_vm9 = vcmp.eq.f32.partialorder %v930_v61, inf  ;;  %v942_v42 = vand.u32 2147483648, %v930_v61  ;;  %vm941_vm10 = vcmp.eq.f32.partialorder %v930_v61, 0.0 }
 0x52e   :  { %1062 = vmatpush.msrb.mxu2 %v1031_v30 }
 0x533   :  { %v1268_v32 = vpop.eup %1267 }
 0x534   :  { %v933_v20 = vmul.f32 %v1268_v32, %v930_v61 }
 0x535   :  { %v927_v35 = vpop.xlane.xlu0 %926 }
 0x536   :  { %v934_v34 = vmul.f32 %v1268_v32, %v933_v20  ;;  %v929_v36 = vmul.f32 %v927_v35, %v1722_v18 }
 0x538   :  { %v935_v37 = vmul.f32 0.5, %v934_v34  ;;  %v931_v38 = vadd.f32 1e-05, %v929_v36  ;;  %v1039_v36 = vperm.slane %v1554_v9, 5 }
 0x53a   :  { %v936_v39 = vsub.f32 1.5, %v935_v37  ;;  %1269 = vrsqrt.f32 %v931_v38  ;;  %vm951_vm11 = vcmp.eq.f32.partialorder %v931_v38, inf  ;;  %v954_v0 = vand.u32 2147483648, %v931_v38 }
 0x53b   :  { %vm953_vm13 = vcmp.eq.f32.partialorder %v931_v38, 0.0 }
 0x53c   :  { %v937_v40 = vmul.f32 %v1268_v32, %v936_v39 }
 0x53e   :  { %v938_v41 = vmul.f32 %v937_v40, %v930_v61 }
 0x540   :  { %v940_v3 = vsel %vm939_vm9, %v930_v61, %v938_v41  ;;  %v1270_v44 = vpop.eup %1269 }
 0x541   :  { %v943_v56 = vsel %vm941_vm10, %v942_v42, %v940_v3  ;;  %v945_v45 = vmul.f32 %v1270_v44, %v931_v38 }
 0x542   :  { %1271 = vrcp.f32 %v943_v56  ;;  %v967_v59 = vand.u32 2147483648, %v943_v56  ;;  %v965_v63 = vand.u32 2147483647, %v943_v56  ;;  %vm961_vm14 = vweird.f32 %v943_v56 }
 0x543   :  { %v946_v46 = vmul.f32 %v1270_v44, %v945_v45 }
 0x544   :  { %v968_v6 = vor.u32 1.1754944e-38, %v967_v59  ;;  %vm966_vm2 = vcmp.eq.f32.partialorder %v965_v63, 8.507059e+37 }
 0x545   :  { %v947_v47 = vmul.f32 0.5, %v946_v46 }
 0x547   :  { %v948_v52 = vsub.f32 1.5, %v947_v47 }
 0x548   :  { %v1272_v50 = vpop.eup %1271 }
 0x549   :  { %v957_v54 = vmul.f32 %v1272_v50, %v943_v56  ;;  %v949_v29 = vmul.f32 %v1270_v44, %v948_v52  ;;  %vm962_vm12 = vweird.f32 %v1272_v50 }
 0x54a   :  { %vm963_vm15 = vmor %vm961_vm14, %vm962_vm12 }
 0x54b   :  { %v958_v57 = vsub.f32 1.0, %v957_v54  ;;  %v950_v60 = vmul.f32 %v949_v29, %v931_v38 }
 0x54d   :  { %v959_v62 = vmul.f32 %v1272_v50, %v958_v57  ;;  %v952_v2 = vsel %vm951_vm11, %v931_v38, %v950_v60 }
 0x54e   :  { %v955_v8 = vsel %vm953_vm13, %v954_v0, %v952_v2 }
 0x54f   :  { %v960_v7 = vadd.f32 %v1272_v50, %v959_v62  ;;  %1273 = vrcp.f32 %v955_v8  ;;  %v982_v19 = vand.u32 2147483648, %v955_v8  ;;  %v980_v51 = vand.u32 2147483647, %v955_v8 }
 0x550   :  { %vm976_vm4 = vweird.f32 %v955_v8 }
 0x551   :  { %v964_v10 = vsel %vm963_vm15, %v1272_v50, %v960_v7  ;;  %v983_v43 = vor.u32 1.1754944e-38, %v982_v19  ;;  %vm981_vm6 = vcmp.eq.f32.partialorder %v980_v51, 8.507059e+37 }
 0x552   :  { %v969_v11 = vsel %vm966_vm2, %v968_v6, %v964_v10 }
 0x553   :  { %v970_v12 = vmul.f32 %v969_v11, %v1725_v53 }
 0x555   :  { %v987_v14 = vmul.f32 %v986_v33, %v970_v12  ;;  %v1274_v15 = vpop.eup %1273 }
 0x556   :  { %v972_v17 = vmul.f32 %v1274_v15, %v955_v8  ;;  %vm977_vm3 = vweird.f32 %v1274_v15 }
 0x557   :  { %v990_v16 = vadd.f32 %v989_v13, %v987_v14  ;;  %vm978_vm5 = vmor %vm976_vm4, %vm977_vm3 }
 0x558   :  { %v973_v4 = vsub.f32 1.0, %v972_v17 }
 0x559   :  { %1209 = vmatmul.msk.f32.vlgmr.msra.gmra.mxu1 %vm130_vm0, %v990_v16 }
 0x55a   :  { %v974_v5 = vmul.f32 %v1274_v15, %v973_v4 }
 0x55c   :  { %v975_v21 = vadd.f32 %v1274_v15, %v974_v5 }
 0x55e   :  { %v979_v23 = vsel %vm978_vm5, %v1274_v15, %v975_v21 }
 0x55f   :  { %v984_v53 = vsel %vm981_vm6, %v983_v43, %v979_v23 }
 0x560   :  { %v985_v24 = vmul.f32 %v984_v53, %v1731_v22  ;;  %v1232_v22 = vld [vmem:[%s1800_s7] ss:$0 sm:$0xff]  ;;  %s1449_s7 = smov [#allocation11]  }
 0x561   :  { %s1160_s8 = sshll.u32 %s1449_s7, 4  ;;  %s1161_s8 = int_to_ptr.vmem [resolvable:$true] %s1160_s8 }
 0x562   :  { %v988_v25 = vmul.f32 %v986_v33, %v985_v24 }
 0x564   :  { %v991_v26 = vadd.f32 %v989_v13, %v988_v25 }
 0x566   :  { %1210 = vmatmul.msk.f32.gmra.mxu1 %vm130_vm0, %v991_v26 }
 0x5d6   :  { %v1023_v61 = vpop.f32.mrf.mxu1 }
 0x5d7   :  { %v1024_v31 = vadd.f32 %v1232_v22, %v1023_v61  ;;  %v1151_v61 = vperm.slane %v1283_v27, 7 }
 0x5d9   :  { %v1029_v32 = vmax.f32 %v1024_v31, 0.0 }
 0x5db   :  { %1211 = vmatmul.msk.f32.vlgmr.msrb.gmra.mxu2 %vm1040_vm7, %v1029_v32 }
 0x5e3   :  { %v1026_v20 = vpop.f32.mrf.mxu1 }
 0x5e4   :  { %v1027_v34 = vadd.f32 %v1232_v22, %v1026_v20 }
 0x5e6   :  { %v1030_v35 = vmax.f32 %v1027_v34, 0.0 }
 0x5e8   :  { %1212 = vmatmul.msk.f32.gmra.mxu2 %vm1040_vm7, %v1030_v35 }
 0x65e   :  { %v1064_v37 = vpop.f32.mrf.mxu2 }
 0x65f   :  { %v1065_v38 = vadd.f32 %v1064_v37, %v1039_v36 }
 0x661   :  { %v1070_v39 = vadd.f32 %v1065_v38, %v990_v16 }
 0x663   :  { %v1072_v40 = vsel %vm130_vm0, %v1070_v39, 0.0 }
 0x664   :  { %1073 = vadd.xlane.f32.xlu2 %v1072_v40 }
 0x66b   :  { %v1067_v41 = vpop.f32.mrf.mxu2 }
 0x66c   :  { %v1068_v42 = vadd.f32 %v1067_v41, %v1039_v36 }
 0x66e   :  { %v1071_v3 = vadd.f32 %v1068_v42, %v991_v26 }
 0x670   :  { %v1075_v44 = vsel %vm130_vm0, %v1071_v3, 0.0 }
 0x671   :  { %1076 = vadd.xlane.f32.xlu1 %v1075_v44 }
 0x6d7   :  { %v1074_v56 = vpop.xlane.xlu2 %1073 }
 0x6d8   :  { %v1078_v45 = vmul.f32 %v1074_v56, %v1722_v18 }
 0x6da   :  { %v1080_v46 = vsub.f32 %v1070_v39, %v1078_v45 }
 0x6dc   :  { %v1082_v47 = vmul.f32 %v1080_v46, %v1080_v46 }
 0x6de   :  { %v1084_v48 = vsel %vm130_vm0, %v1082_v47, 0.0 }
 0x6df   :  { %1085 = vadd.xlane.f32.xlu0 %v1084_v48 }
 0x6e4   :  { %v1077_v9 = vpop.xlane.xlu1 %1076 }
 0x6e5   :  { %v1079_v49 = vmul.f32 %v1077_v9, %v1722_v18 }
 0x6e7   :  { %v1777_v50 = vsub.f32 %v1071_v3, %v1079_v49 }
 0x6e9   :  { %v1083_v52 = vmul.f32 %v1777_v50, %v1777_v50 }
 0x6eb   :  { %v1087_v54 = vsel %vm130_vm0, %v1083_v52, 0.0 }
 0x6ec   :  { %1088 = vadd.xlane.f32.xlu2 %v1087_v54 }
 0x752   :  { %v1086_v55 = vpop.xlane.xlu0 %1085 }
 0x753   :  { %v1090_v29 = vmul.f32 %v1086_v55, %v1722_v18 }
 0x755   :  { %v1092_v57 = vadd.f32 1e-05, %v1090_v29 }
 0x757   :  { %1275 = vrsqrt.f32 %v1092_v57  ;;  %vm1101_vm8 = vcmp.eq.f32.partialorder %v1092_v57, inf  ;;  %v1104_v6 = vand.u32 2147483648, %v1092_v57  ;;  %vm1103_vm1 = vcmp.eq.f32.partialorder %v1092_v57, 0.0 }
 0x75d   :  { %v1276_v58 = vpop.eup %1275 }
 0x75e   :  { %v1095_v59 = vmul.f32 %v1276_v58, %v1092_v57 }
 0x75f   :  { %v1089_v62 = vpop.xlane.xlu2 %1088 }
 0x760   :  { %v1096_v60 = vmul.f32 %v1276_v58, %v1095_v59  ;;  %v1091_v63 = vmul.f32 %v1089_v62, %v1722_v18 }
 0x762   :  { %v1097_v0 = vmul.f32 0.5, %v1096_v60  ;;  %v1093_v1 = vadd.f32 1e-05, %v1091_v63 }
 0x764   :  { %v1098_v2 = vsub.f32 1.5, %v1097_v0  ;;  %1277 = vrsqrt.f32 %v1093_v1  ;;  %vm1113_vm9 = vcmp.eq.f32.partialorder %v1093_v1, inf  ;;  %v1116_v51 = vand.u32 2147483648, %v1093_v1 }
 0x765   :  { %vm1115_vm11 = vcmp.eq.f32.partialorder %v1093_v1, 0.0 }
 0x766   :  { %v1099_v7 = vmul.f32 %v1276_v58, %v1098_v2 }
 0x768   :  { %v1100_v8 = vmul.f32 %v1099_v7, %v1092_v57 }
 0x76a   :  { %v1102_v10 = vsel %vm1101_vm8, %v1092_v57, %v1100_v8  ;;  %v1278_v33 = vpop.eup %1277 }
 0x76b   :  { %v1105_v11 = vsel %vm1103_vm1, %v1104_v6, %v1102_v10  ;;  %v1107_v12 = vmul.f32 %v1278_v33, %v1093_v1 }
 0x76c   :  { %1279 = vrcp.f32 %v1105_v11  ;;  %v1129_v5 = vand.u32 2147483648, %v1105_v11  ;;  %v1127_v43 = vand.u32 2147483647, %v1105_v11  ;;  %vm1123_vm12 = vweird.f32 %v1105_v11 }
 0x76d   :  { %v1108_v13 = vmul.f32 %v1278_v33, %v1107_v12 }
 0x76e   :  { %v1130_v25 = vor.u32 1.1754944e-38, %v1129_v5  ;;  %vm1128_vm14 = vcmp.eq.f32.partialorder %v1127_v43, 8.507059e+37 }
 0x76f   :  { %v1109_v14 = vmul.f32 0.5, %v1108_v13 }
 0x771   :  { %v1110_v16 = vsub.f32 1.5, %v1109_v14 }
 0x772   :  { %v1280_v15 = vpop.eup %1279 }
 0x773   :  { %v1119_v17 = vmul.f32 %v1280_v15, %v1105_v11  ;;  %v1111_v18 = vmul.f32 %v1278_v33, %v1110_v16  ;;  %vm1124_vm10 = vweird.f32 %v1280_v15 }
 0x774   :  { %vm1125_vm13 = vmor %vm1123_vm12, %vm1124_vm10 }
 0x775   :  { %v1120_v4 = vsub.f32 1.0, %v1119_v17  ;;  %v1112_v19 = vmul.f32 %v1111_v18, %v1093_v1 }
 0x777   :  { %v1121_v21 = vmul.f32 %v1280_v15, %v1120_v4  ;;  %v1114_v23 = vsel %vm1113_vm9, %v1093_v1, %v1112_v19 }
 0x778   :  { %v1117_v53 = vsel %vm1115_vm11, %v1116_v51, %v1114_v23 }
 0x779   :  { %v1122_v24 = vadd.f32 %v1280_v15, %v1121_v21  ;;  %1281 = vrcp.f32 %v1117_v53  ;;  %v1144_v36 = vand.u32 2147483648, %v1117_v53  ;;  %v1142_v38 = vand.u32 2147483647, %v1117_v53 }
 0x77a   :  { %vm1138_vm2 = vweird.f32 %v1117_v53 }
 0x77b   :  { %v1126_v26 = vsel %vm1125_vm13, %v1280_v15, %v1122_v24  ;;  %v1145_v40 = vor.u32 1.1754944e-38, %v1144_v36  ;;  %vm1143_vm4 = vcmp.eq.f32.partialorder %v1142_v38, 8.507059e+37 }
 0x77c   :  { %v1131_v30 = vsel %vm1128_vm14, %v1130_v25, %v1126_v26 }
 0x77d   :  { %v1132_v22 = vmul.f32 %v1131_v30, %v1080_v46 }
 0x77f   :  { %v1149_v31 = vmul.f32 %v1148_v28, %v1132_v22  ;;  %v1282_v32 = vpop.eup %1281 }
 0x780   :  { %v1134_v20 = vmul.f32 %v1282_v32, %v1117_v53  ;;  %vm1139_vm15 = vweird.f32 %v1282_v32 }
 0x781   :  { %v1152_v34 = vadd.f32 %v1151_v61, %v1149_v31  ;;  %vm1140_vm3 = vmor %vm1138_vm2, %vm1139_vm15 }
 0x782   :  { %v1135_v35 = vsub.f32 1.0, %v1134_v20 }
 0x783   :  { %1154 = vst.msk [vmem:[#allocation11] sm:$0xff] %vm130_vm0, %v1152_v34 }
 0x784   :  { %v1136_v37 = vmul.f32 %v1282_v32, %v1135_v35 }
 0x786   :  { %v1137_v39 = vadd.f32 %v1282_v32, %v1136_v37 }
 0x788   :  { %v1141_v41 = vsel %vm1140_vm3, %v1282_v32, %v1137_v39 }
 0x789   :  { %v1146_v42 = vsel %vm1143_vm4, %v1145_v40, %v1141_v41 }
 0x78a   :  { %v1147_v3 = vmul.f32 %v1146_v42, %v1777_v50 }
 0x78c   :  { %v1150_v44 = vmul.f32 %v1148_v28, %v1147_v3 }
 0x78e   :  { %v1153_v56 = vadd.f32 %v1151_v61, %v1150_v44 }
 0x790   :  { %1155 = vst.msk [vmem:[#allocation11 + $0x8] sm:$0xff] %vm130_vm0, %v1153_v56 }
 0x791   :  { %1168 = dma.vmem_to_hbm [thread:$0]  %s1161_s8, 256, %s1163_s2, [#allocation4], %s1437_s21, %s1437_s21, %s1438_s22  }
 0x792   :  { %1434 = dma.done.wait [#allocation4], 256  }
 0x793   :  { %1435 = vsyncadd [#allocation4], 4294967040 }
 0x794   :  { %1173 = vsyncpa [#allocation3], 1 }
 0x795   :  { %1174 = vsyncpa [#allocation6], 1 }
 0x796   :  { %1175 = vsyncpa [#allocation9], 1 }
 0x797   :  { %1176 = vsyncpa [#allocation4], 1 }

</bundles_post_ra>
